<compile_context>
chip_gen: v6e
topology: v6e:2x2x1
jax: 0.10.0
libtpu: 0.0.40
codegen_flags: <defaults>
</compile_context>

<pallas_src>
import functools

import jax
import jax.numpy as jnp
from jax import lax
from jax.experimental import pallas as pl
from jax.experimental.pallas import tpu as pltpu


def _sigmoid(x):
    # One EUP op (tanh) instead of the exp + reciprocal lowering.
    return 0.5 * jnp.tanh(0.5 * x) + 0.5


def _round_up(x, m):
    return -(-x // m) * m


def _pick_time_chunk(T, Bg, I, H, mm_bytes, budget_bytes=8 << 20, cap=256):
    """Byte-budgeted time chunk: double-buffered x chunk + f32 gate scratch."""
    per_step = Bg * (2 * I * mm_bytes + 4 * H * 4)
    tc = max(1, budget_bytes // per_step)
    return int(min(tc, cap, T))


# ----------------------------- Pallas kernel ------------------------------ #

def _elstm2_kernel(x_ref, wih0_ref, whh0_ref, w1_ref, b0_ref, b1_ref,
                   h_out_ref, c_out_ref, gx_sc,
                   *, seq_len, time_chunk, needs_mask, unroll):
    """Fused 2-layer LSTM recurrence over one time chunk (one batch group).

    x_ref    : (1, Tc*Bg, I)  raw input slab for this chunk (matmul dtype)
    wih0_ref : (I, 4H)        layer-0 input weights   (VMEM-resident)
    whh0_ref : (H, 4H)        layer-0 recurrent weights
    w1_ref   : (2H, 4H)       layer-1 merged [W_ih ; W_hh]
    b0_ref   : (1, 4H)        layer-0 combined bias (f32)
    b1_ref   : (1, 4H)        layer-1 combined bias (f32)
    h_out_ref, c_out_ref : (2, Bg, H) f32 final states; also the recurrent
                           carry across time chunks (constant out block).
    gx_sc    : (Tc*Bg, 4H) f32 scratch holding the hoisted input projection.
    """
    _, Bg, H = h_out_ref.shape
    Tc = time_chunk
    chunk = pl.program_id(1)
    mm_dtype = whh0_ref.dtype

    @pl.when(chunk == 0)
    def _():
        h_out_ref[...] = jnp.zeros_like(h_out_ref)
        c_out_ref[...] = jnp.zeros_like(c_out_ref)

    # Hoisted layer-0 input projection: ONE lane-dense MXU matmul per chunk,
    # (Tc*Bg, I) @ (I, 4H), f32-accumulated, kept entirely in VMEM.
    gx_sc[...] = (
        jnp.dot(x_ref[0], wih0_ref[...], preferred_element_type=jnp.float32)
        + b0_ref[...])

    whh0 = whh0_ref[...]
    w1 = w1_ref[...]                  # (2H, 4H) = [W_ih1 ; W_hh1]
    b1 = b1_ref[...]                  # (1, 4H): implicit row-broadcast per step

    def lstm_cell(gates, c_prev):
        i_g = _sigmoid(gates[:, 0 * H:1 * H])
        f_g = _sigmoid(gates[:, 1 * H:2 * H])
        g_g = jnp.tanh(gates[:, 2 * H:3 * H])
        o_g = _sigmoid(gates[:, 3 * H:4 * H])
        c_new = f_g * c_prev + i_g * g_g
        h_new = o_g * jnp.tanh(c_new)
        return h_new, c_new

    def step(t, carry):
        h0, c0, h1, c1 = carry
        row = pl.multiple_of(t * Bg, Bg)
        # Layer 0: input part precomputed -> single (Bg,H)@(H,4H) recurrent dot.
        g0 = gx_sc[pl.ds(row, Bg), :] + jnp.dot(
            h0.astype(mm_dtype), whh0, preferred_element_type=jnp.float32)
        h0n, c0n = lstm_cell(g0, c0)
        # Layer 1: single merged (Bg,2H)@(2H,4H) dot on [h0_new | h1_prev].
        h01 = jnp.concatenate([h0n, h1], axis=-1).astype(mm_dtype)
        g1 = jnp.dot(h01, w1, preferred_element_type=jnp.float32) + b1
        h1n, c1n = lstm_cell(g1, c1)
        if needs_mask:  # static Python flag: only emitted for a ragged last chunk
            valid = (chunk * Tc + t) < seq_len
            h0n = jnp.where(valid, h0n, h0)
            c0n = jnp.where(valid, c0n, c0)
            h1n = jnp.where(valid, h1n, h1)
            c1n = jnp.where(valid, c1n, c1)
        return h0n, c0n, h1n, c1n

    # Recurrent state is carried in the VMEM-resident output blocks.
    carry0 = (h_out_ref[0], c_out_ref[0], h_out_ref[1], c_out_ref[1])
    h0, c0, h1, c1 = lax.fori_loop(0, Tc, step, carry0, unroll=unroll)

    h_out_ref[0] = h0
    h_out_ref[1] = h1
    c_out_ref[0] = c0
    c_out_ref[1] = c1


# --------------------------- eLSTM forward (glue) -------------------------- #

def elstm_forward(frame_features, params, *, time_chunk=None,
                  matmul_dtype=jnp.float32):
    """Equivalent of eLSTM.forward: returns (h_n, c_n), each (2, B, H).

    matmul_dtype=jnp.bfloat16 is the recommended production setting on
    v6e/v7x (bf16-native MXU); accumulation, recurrent state and gate math
    stay f32 on every generation.
    """
    x = frame_features.astype(jnp.float32)
    T, B, I = x.shape
    layers = params["lstm_layers"]
    assert len(layers) == 2, "fused kernel implements the 2-layer eLSTM"
    l0, l1 = layers
    H = l0["w_hh"].shape[0]

    # ---- shape prep: pad batch to a multiple of 8 sublanes ---------------- #
    B_pad = _round_up(B, 8)
    if B_pad != B:
        x = jnp.pad(x, ((0, 0), (0, B_pad - B), (0, 0)))

    # v7x megacore: split the padded batch across the 2 TensorCores when it is
    # big enough; each group is an independent recurrence ("parallel" axis).
    batch_groups = 2 if (B_pad >= 16 and B_pad % 16 == 0) else 1
    Bg = B_pad // batch_groups

    # ---- time chunking (byte-budgeted; ragged tail masked in-kernel) ------ #
    mm_bytes = jnp.dtype(matmul_dtype).itemsize
    if time_chunk is None:
        time_chunk = _pick_time_chunk(T, Bg, I, H, mm_bytes)
    Tc = int(max(1, min(time_chunk, T)))
    n_chunks = -(-T // Tc)
    T_pad = n_chunks * Tc
    if T_pad != T:
        x = jnp.pad(x, ((0, T_pad - T), (0, 0), (0, 0)))

    # ---- operand prep ------------------------------------------------------ #
    # x laid out as (groups, T_pad*Bg, I): a 2-D time*batch slab per group, so
    # the per-chunk input projection needs no in-kernel reshape.
    x_mm = x.astype(matmul_dtype)
    xg = (x_mm.reshape(T_pad, batch_groups, Bg, I)
              .transpose(1, 0, 2, 3)
              .reshape(batch_groups, T_pad * Bg, I))
    wih0 = l0["w_ih"].astype(matmul_dtype)                                   # (I, 4H)
    whh0 = l0["w_hh"].astype(matmul_dtype)                                   # (H, 4H)
    w1 = jnp.concatenate([l1["w_ih"], l1["w_hh"]], axis=0).astype(matmul_dtype)  # (2H,4H)
    b0 = l0["b"].astype(jnp.float32)                                         # (1, 4H)
    b1 = l1["b"].astype(jnp.float32)                                         # (1, 4H)

    kernel = functools.partial(
        _elstm2_kernel,
        seq_len=T, time_chunk=Tc, needs_mask=(T_pad != T),
        unroll=int(min(8, Tc)))

    grid_spec = pltpu.PrefetchScalarGridSpec(
        num_scalar_prefetch=0,
        grid=(batch_groups, n_chunks),
        in_specs=[
            pl.BlockSpec((1, Tc * Bg, I), lambda p, i: (p, i, 0)),   # x chunk
            pl.BlockSpec((I, 4 * H), lambda p, i: (0, 0)),           # W_ih  layer 0
            pl.BlockSpec((H, 4 * H), lambda p, i: (0, 0)),           # W_hh  layer 0
            pl.BlockSpec((2 * H, 4 * H), lambda p, i: (0, 0)),       # [W_ih;W_hh] layer 1
            pl.BlockSpec((1, 4 * H), lambda p, i: (0, 0)),           # bias layer 0
            pl.BlockSpec((1, 4 * H), lambda p, i: (0, 0)),           # bias layer 1
        ],
        out_specs=[
            pl.BlockSpec((2, Bg, H), lambda p, i: (0, p, 0)),
            pl.BlockSpec((2, Bg, H), lambda p, i: (0, p, 0)),
        ],
        scratch_shapes=[pltpu.VMEM((Tc * Bg, 4 * H), jnp.float32)],
    )

    h_last, c_last = pl.pallas_call(
        kernel,
        out_shape=(
            jax.ShapeDtypeStruct((2, B_pad, H), jnp.float32),
            jax.ShapeDtypeStruct((2, B_pad, H), jnp.float32),
        ),
        grid_spec=grid_spec,
        compiler_params=pltpu.CompilerParams(
            # Batch groups are independent; the time recurrence is serial.
            dimension_semantics=("parallel", "arbitrary"),
            vmem_limit_bytes=32 * 1024 * 1024,
        ),
    )(xg, wih0, whh0, w1, b0, b1)

    return h_last[:, :B, :], c_last[:, :B, :]


# ------------------------------ param setup -------------------------------- #

def init_elstm_params(key, input_size, hidden_size, num_layers=2):
    """Synthetic weights, PyTorch nn.LSTM-style uniform init, fused layout.

    Fused layout per layer (gate column order i | f | g | o):
      w_ih: (in_sz, 4H), w_hh: (H, 4H), b: (1, 4H) = b_ih + b_hh
    """
    H = hidden_size
    bound = 1.0 / jnp.sqrt(jnp.float32(H))
    layers = []
    for layer in range(num_layers):
        in_sz = input_size if layer == 0 else hidden_size
        key, k1, k2, k3, k4 = jax.random.split(key, 5)
        # PyTorch stores weight_ih_l{k}: (4H, in_sz), rows ordered (i, f, g, o).
        w_ih_pt = jax.random.uniform(k1, (4 * H, in_sz), jnp.float32, -bound, bound)
        w_hh_pt = jax.random.uniform(k2, (4 * H, H), jnp.float32, -bound, bound)
        b_ih = jax.random.uniform(k3, (4 * H,), jnp.float32, -bound, bound)
        b_hh = jax.random.uniform(k4, (4 * H,), jnp.float32, -bound, bound)
        layers.append({
            "w_ih": jnp.transpose(w_ih_pt),          # (in_sz, 4H)
            "w_hh": jnp.transpose(w_hh_pt),          # (H, 4H)
            "b": (b_ih + b_hh).reshape(1, 4 * H),    # (1, 4H)
        })

    # linear_mu / linear_var exist in the module but are unused in forward().
    key, k5, k6, k7, k8 = jax.random.split(key, 5)
    lin_bound = 1.0 / jnp.sqrt(jnp.float32(H))
    return {
        "lstm_layers": layers,
        "linear_mu_w": jax.random.uniform(k5, (H, H), jnp.float32, -lin_bound, lin_bound),
        "linear_mu_b": jax.random.uniform(k6, (H,), jnp.float32, -lin_bound, lin_bound),
        "linear_var_w": jax.random.uniform(k7, (H, H), jnp.float32, -lin_bound, lin_bound),
        "linear_var_b": jax.random.uniform(k8, (H,), jnp.float32, -lin_bound, lin_bound),
    }


# -------------------------- pure-JAX reference ----------------------------- #

def elstm_reference(frame_features, params):
    x = frame_features
    h_list, c_list = [], []
    for lp in params["lstm_layers"]:
        B = x.shape[1]
        H = lp["w_hh"].shape[0]
        h0 = jnp.zeros((B, H), jnp.float32)
        c0 = jnp.zeros((B, H), jnp.float32)

        def step(carry, x_t, lp=lp, H=H):
            h, c = carry
            gates = x_t @ lp["w_ih"] + h @ lp["w_hh"] + lp["b"]
            i_g = jax.nn.sigmoid(gates[:, 0 * H:1 * H])
            f_g = jax.nn.sigmoid(gates[:, 1 * H:2 * H])
            g_g = jnp.tanh(gates[:, 2 * H:3 * H])
            o_g = jax.nn.sigmoid(gates[:, 3 * H:4 * H])
            c_new = f_g * c + i_g * g_g
            h_new = o_g * jnp.tanh(c_new)
            return (h_new, c_new), h_new

        (h_T, c_T), y = lax.scan(step, (h0, c0), x)
        h_list.append(h_T)
        c_list.append(c_T)
        x = y
    return jnp.stack(h_list, 0), jnp.stack(c_list, 0)


# ----------------------------------- main ---------------------------------- #

if __name__ == "__main__":
    seq_len, batch, input_size, hidden_size = 8, 2, 16, 32

    key = jax.random.PRNGKey(0)
    key, pkey, xkey = jax.random.split(key, 3)
    params = init_elstm_params(pkey, input_size, hidden_size, num_layers=2)
    frame_features = jax.random.normal(
        xkey, (seq_len, batch, input_size), jnp.float32)

    fwd = jax.jit(elstm_forward, static_argnames=("time_chunk", "matmul_dtype"))
    h_ref, c_ref = elstm_reference(frame_features, params)

    # Default path: f32 matmul operands, single time chunk.
    h_last, c_last = fwd(frame_features, params)
    jax.block_until_ready((h_last, c_last))
    assert h_last.shape == (2, batch, hidden_size)
    assert c_last.shape == (2, batch, hidden_size)
    assert jnp.allclose(h_last, h_ref, rtol=1e-3, atol=1e-3)
    assert jnp.allclose(c_last, c_ref, rtol=1e-3, atol=1e-3)

    # Ragged time chunking: T=8 with Tc=3 -> padded to 9, tail step masked.
    h2, c2 = fwd(frame_features, params, time_chunk=3)
    jax.block_until_ready((h2, c2))
    assert jnp.allclose(h2, h_ref, rtol=1e-3, atol=1e-3)
    assert jnp.allclose(c2, c_ref, rtol=1e-3, atol=1e-3)

    # bf16 MXU-operand path (v6e/v7x production setting); f32 carry/accum.
    h3, c3 = fwd(frame_features, params, matmul_dtype=jnp.bfloat16)
    jax.block_until_ready((h3, c3))
    assert jnp.allclose(h3, h_ref, rtol=5e-2, atol=5e-2)
    assert jnp.allclose(c3, c_ref, rtol=5e-2, atol=5e-2)

    print("KERNEL_OK")
</pallas_src>

<mosaic_0001>
module attributes {stable_mosaic.version = 11 : i64} {
  func.func @_elstm2_kernel(%arg0: i32, %arg1: i32, %arg2: memref<1x64x16xf32, #tpu.memory_space<vmem>>, %arg3: memref<16x128xf32, #tpu.memory_space<vmem>>, %arg4: memref<32x128xf32, #tpu.memory_space<vmem>>, %arg5: memref<64x128xf32, #tpu.memory_space<vmem>>, %arg6: memref<1x128xf32, #tpu.memory_space<vmem>>, %arg7: memref<1x128xf32, #tpu.memory_space<vmem>>, %arg8: memref<2x8x32xf32, #tpu.memory_space<vmem>>, %arg9: memref<2x8x32xf32, #tpu.memory_space<vmem>>, %arg10: memref<64x128xf32, #tpu.memory_space<vmem>>) attributes {dimension_semantics = [#tpu.dimension_semantics<parallel>, #tpu.dimension_semantics<arbitrary>], iteration_bounds = array<i64: 1, 1>, scalar_prefetch = 0 : i64, scratch_operands = 1 : i64, tpu.core_type = #tpu.core_type<tc>, window_params = [{transform_indices = @transform_0, window_bounds = array<i64: 1, 64, 16>}, {pipeline_mode = #tpu.pipeline_mode<synchronous>, transform_indices = @transform_1, window_bounds = array<i64: 16, 128>}, {pipeline_mode = #tpu.pipeline_mode<synchronous>, transform_indices = @transform_2, window_bounds = array<i64: 32, 128>}, {pipeline_mode = #tpu.pipeline_mode<synchronous>, transform_indices = @transform_3, window_bounds = array<i64: 64, 128>}, {pipeline_mode = #tpu.pipeline_mode<synchronous>, transform_indices = @transform_4, window_bounds = array<i64: 1, 128>}, {pipeline_mode = #tpu.pipeline_mode<synchronous>, transform_indices = @transform_5, window_bounds = array<i64: 1, 128>}, {transform_indices = @transform_6, window_bounds = array<i64: 2, 8, 32>}, {transform_indices = @transform_7, window_bounds = array<i64: 2, 8, 32>}]} {
    %c0_i32 = arith.constant 0 : i32
    %0 = arith.cmpi eq, %arg1, %c0_i32 : i32
    %1 = arith.extui %0 : i1 to i32
    %c0_i32_0 = arith.constant 0 : i32
    %2 = arith.cmpi ne, %1, %c0_i32_0 : i32
    scf.if %2 {
      %cst_215 = arith.constant 0.000000e+00 : f32
      %610 = vector.broadcast %cst_215 : f32 to vector<2x8x32xf32>
      %c0_216 = arith.constant 0 : index
      %c0_217 = arith.constant 0 : index
      %c0_218 = arith.constant 0 : index
      %611 = vector.load %arg8[%c0_216, %c0_217, %c0_218] : memref<2x8x32xf32, #tpu.memory_space<vmem>>, vector<2x8x32xf32>
      tpu.vector_store %arg8[%c0_216, %c0_217, %c0_218], %610 {strides = array<i32>} : memref<2x8x32xf32, #tpu.memory_space<vmem>>, vector<2x8x32xf32>,
      %cst_219 = arith.constant 0.000000e+00 : f32
      %612 = vector.broadcast %cst_219 : f32 to vector<2x8x32xf32>
      %c0_220 = arith.constant 0 : index
      %c0_221 = arith.constant 0 : index
      %c0_222 = arith.constant 0 : index
      %613 = vector.load %arg9[%c0_220, %c0_221, %c0_222] : memref<2x8x32xf32, #tpu.memory_space<vmem>>, vector<2x8x32xf32>
      tpu.vector_store %arg9[%c0_220, %c0_221, %c0_222], %612 {strides = array<i32>} : memref<2x8x32xf32, #tpu.memory_space<vmem>>, vector<2x8x32xf32>,
    } else {
    }
    %c0 = arith.constant 0 : index
    %c0_1 = arith.constant 0 : index
    %c0_2 = arith.constant 0 : index
    %3 = vector.load %arg2[%c0, %c0_1, %c0_2] : memref<1x64x16xf32, #tpu.memory_space<vmem>>, vector<1x64x16xf32>
    %4 = vector.shape_cast %3 : vector<1x64x16xf32> to vector<64x16xf32>
    %c0_3 = arith.constant 0 : index
    %c0_4 = arith.constant 0 : index
    %5 = vector.load %arg3[%c0_3, %c0_4] : memref<16x128xf32, #tpu.memory_space<vmem>>, vector<16x128xf32>
    %cst = arith.constant dense<0.000000e+00> : vector<64x128xf32>
    %6 = tpu.matmul %4, %5, %cst {dimension_numbers = #tpu.dot_dimension_numbers<[1], [0], [0], [1], [0, 0, 1, 1], [], []>} : vector<64x16xf32>, vector<16x128xf32>, vector<64x128xf32> -> vector<64x128xf32>
    %c0_5 = arith.constant 0 : index
    %c0_6 = arith.constant 0 : index
    %7 = vector.load %arg6[%c0_5, %c0_6] : memref<1x128xf32, #tpu.memory_space<vmem>>, vector<1x128xf32>
    %8 = vector.broadcast %7 : vector<1x128xf32> to vector<64x128xf32>
    %9 = arith.addf %6, %8 : vector<64x128xf32>
    %c0_7 = arith.constant 0 : index
    %c0_8 = arith.constant 0 : index
    %10 = vector.load %arg10[%c0_7, %c0_8] : memref<64x128xf32, #tpu.memory_space<vmem>>, vector<64x128xf32>
    tpu.vector_store %arg10[%c0_7, %c0_8], %9 {strides = array<i32>} : memref<64x128xf32, #tpu.memory_space<vmem>>, vector<64x128xf32>,
    %c0_9 = arith.constant 0 : index
    %c0_10 = arith.constant 0 : index
    %11 = vector.load %arg4[%c0_9, %c0_10] : memref<32x128xf32, #tpu.memory_space<vmem>>, vector<32x128xf32>
    %c0_11 = arith.constant 0 : index
    %c0_12 = arith.constant 0 : index
    %12 = vector.load %arg5[%c0_11, %c0_12] : memref<64x128xf32, #tpu.memory_space<vmem>>, vector<64x128xf32>
    %c0_13 = arith.constant 0 : index
    %c0_14 = arith.constant 0 : index
    %13 = vector.load %arg7[%c0_13, %c0_14] : memref<1x128xf32, #tpu.memory_space<vmem>>, vector<1x128xf32>
    %c0_15 = arith.constant 0 : index
    %c0_16 = arith.constant 0 : index
    %c0_17 = arith.constant 0 : index
    %14 = vector.load %arg8[%c0_15, %c0_16, %c0_17] : memref<2x8x32xf32, #tpu.memory_space<vmem>>, vector<1x8x32xf32>
    %15 = vector.shape_cast %14 : vector<1x8x32xf32> to vector<8x32xf32>
    %c0_18 = arith.constant 0 : index
    %c0_19 = arith.constant 0 : index
    %c0_20 = arith.constant 0 : index
    %16 = vector.load %arg9[%c0_18, %c0_19, %c0_20] : memref<2x8x32xf32, #tpu.memory_space<vmem>>, vector<1x8x32xf32>
    %17 = vector.shape_cast %16 : vector<1x8x32xf32> to vector<8x32xf32>
    %c1 = arith.constant 1 : index
    %c0_21 = arith.constant 0 : index
    %c0_22 = arith.constant 0 : index
    %18 = vector.load %arg8[%c1, %c0_21, %c0_22] : memref<2x8x32xf32, #tpu.memory_space<vmem>>, vector<1x8x32xf32>
    %19 = vector.shape_cast %18 : vector<1x8x32xf32> to vector<8x32xf32>
    %c1_23 = arith.constant 1 : index
    %c0_24 = arith.constant 0 : index
    %c0_25 = arith.constant 0 : index
    %20 = vector.load %arg9[%c1_23, %c0_24, %c0_25] : memref<2x8x32xf32, #tpu.memory_space<vmem>>, vector<1x8x32xf32>
    %21 = vector.shape_cast %20 : vector<1x8x32xf32> to vector<8x32xf32>
    %c0_i32_26 = arith.constant 0 : i32
    %c8_i32 = arith.constant 8 : i32
    %22 = arith.muli %c0_i32_26, %c8_i32 : i32
    %23 = tpu.assume_multiple %22, 8 : i32
    %24 = arith.index_cast %23 : i32 to index
    %c0_27 = arith.constant 0 : index
    %25 = vector.load %arg10[%24, %c0_27] : memref<64x128xf32, #tpu.memory_space<vmem>>, vector<8x128xf32>
    %cst_28 = arith.constant dense<0.000000e+00> : vector<8x128xf32>
    %26 = tpu.matmul %15, %11, %cst_28 {dimension_numbers = #tpu.dot_dimension_numbers<[1], [0], [0], [1], [0, 0, 1, 1], [], []>} : vector<8x32xf32>, vector<32x128xf32>, vector<8x128xf32> -> vector<8x128xf32>
    %27 = arith.addf %25, %26 : vector<8x128xf32>
    %28 = vector.extract_strided_slice %27 {offsets = [0, 0], sizes = [8, 32], strides = [1, 1]} : vector<8x128xf32> to vector<8x32xf32>
    %cst_29 = arith.constant 5.000000e-01 : f32
    %29 = vector.broadcast %cst_29 : f32 to vector<8x32xf32>
    %30 = arith.mulf %29, %28 : vector<8x32xf32>
    %31 = math.tanh %30 : vector<8x32xf32>
    %cst_30 = arith.constant 5.000000e-01 : f32
    %32 = vector.broadcast %cst_30 : f32 to vector<8x32xf32>
    %33 = arith.mulf %32, %31 : vector<8x32xf32>
    %cst_31 = arith.constant 5.000000e-01 : f32
    %34 = vector.broadcast %cst_31 : f32 to vector<8x32xf32>
    %35 = arith.addf %33, %34 : vector<8x32xf32>
    %36 = vector.extract_strided_slice %27 {offsets = [0, 32], sizes = [8, 32], strides = [1, 1]} : vector<8x128xf32> to vector<8x32xf32>
    %cst_32 = arith.constant 5.000000e-01 : f32
    %37 = vector.broadcast %cst_32 : f32 to vector<8x32xf32>
    %38 = arith.mulf %37, %36 : vector<8x32xf32>
    %39 = math.tanh %38 : vector<8x32xf32>
    %cst_33 = arith.constant 5.000000e-01 : f32
    %40 = vector.broadcast %cst_33 : f32 to vector<8x32xf32>
    %41 = arith.mulf %40, %39 : vector<8x32xf32>
    %cst_34 = arith.constant 5.000000e-01 : f32
    %42 = vector.broadcast %cst_34 : f32 to vector<8x32xf32>
    %43 = arith.addf %41, %42 : vector<8x32xf32>
    %44 = vector.extract_strided_slice %27 {offsets = [0, 64], sizes = [8, 32], strides = [1, 1]} : vector<8x128xf32> to vector<8x32xf32>
    %45 = math.tanh %44 : vector<8x32xf32>
    %46 = vector.extract_strided_slice %27 {offsets = [0, 96], sizes = [8, 32], strides = [1, 1]} : vector<8x128xf32> to vector<8x32xf32>
    %cst_35 = arith.constant 5.000000e-01 : f32
    %47 = vector.broadcast %cst_35 : f32 to vector<8x32xf32>
    %48 = arith.mulf %47, %46 : vector<8x32xf32>
    %49 = math.tanh %48 : vector<8x32xf32>
    %cst_36 = arith.constant 5.000000e-01 : f32
    %50 = vector.broadcast %cst_36 : f32 to vector<8x32xf32>
    %51 = arith.mulf %50, %49 : vector<8x32xf32>
    %cst_37 = arith.constant 5.000000e-01 : f32
    %52 = vector.broadcast %cst_37 : f32 to vector<8x32xf32>
    %53 = arith.addf %51, %52 : vector<8x32xf32>
    %54 = arith.mulf %43, %17 : vector<8x32xf32>
    %55 = arith.mulf %35, %45 : vector<8x32xf32>
    %56 = arith.addf %54, %55 : vector<8x32xf32>
    %57 = math.tanh %56 : vector<8x32xf32>
    %58 = arith.mulf %53, %57 : vector<8x32xf32>
    %59 = tpu.concatenate %58, %19 in 1 : vector<8x32xf32>, vector<8x32xf32> -> vector<8x64xf32>
    %cst_38 = arith.constant dense<0.000000e+00> : vector<8x128xf32>
    %60 = tpu.matmul %59, %12, %cst_38 {dimension_numbers = #tpu.dot_dimension_numbers<[1], [0], [0], [1], [0, 0, 1, 1], [], []>} : vector<8x64xf32>, vector<64x128xf32>, vector<8x128xf32> -> vector<8x128xf32>
    %61 = vector.broadcast %13 : vector<1x128xf32> to vector<8x128xf32>
    %62 = arith.addf %60, %61 : vector<8x128xf32>
    %63 = vector.extract_strided_slice %62 {offsets = [0, 0], sizes = [8, 32], strides = [1, 1]} : vector<8x128xf32> to vector<8x32xf32>
    %cst_39 = arith.constant 5.000000e-01 : f32
    %64 = vector.broadcast %cst_39 : f32 to vector<8x32xf32>
    %65 = arith.mulf %64, %63 : vector<8x32xf32>
    %66 = math.tanh %65 : vector<8x32xf32>
    %cst_40 = arith.constant 5.000000e-01 : f32
    %67 = vector.broadcast %cst_40 : f32 to vector<8x32xf32>
    %68 = arith.mulf %67, %66 : vector<8x32xf32>
    %cst_41 = arith.constant 5.000000e-01 : f32
    %69 = vector.broadcast %cst_41 : f32 to vector<8x32xf32>
    %70 = arith.addf %68, %69 : vector<8x32xf32>
    %71 = vector.extract_strided_slice %62 {offsets = [0, 32], sizes = [8, 32], strides = [1, 1]} : vector<8x128xf32> to vector<8x32xf32>
    %cst_42 = arith.constant 5.000000e-01 : f32
    %72 = vector.broadcast %cst_42 : f32 to vector<8x32xf32>
    %73 = arith.mulf %72, %71 : vector<8x32xf32>
    %74 = math.tanh %73 : vector<8x32xf32>
    %cst_43 = arith.constant 5.000000e-01 : f32
    %75 = vector.broadcast %cst_43 : f32 to vector<8x32xf32>
    %76 = arith.mulf %75, %74 : vector<8x32xf32>
    %cst_44 = arith.constant 5.000000e-01 : f32
    %77 = vector.broadcast %cst_44 : f32 to vector<8x32xf32>
    %78 = arith.addf %76, %77 : vector<8x32xf32>
    %79 = vector.extract_strided_slice %62 {offsets = [0, 64], sizes = [8, 32], strides = [1, 1]} : vector<8x128xf32> to vector<8x32xf32>
    %80 = math.tanh %79 : vector<8x32xf32>
    %81 = vector.extract_strided_slice %62 {offsets = [0, 96], sizes = [8, 32], strides = [1, 1]} : vector<8x128xf32> to vector<8x32xf32>
    %cst_45 = arith.constant 5.000000e-01 : f32
    %82 = vector.broadcast %cst_45 : f32 to vector<8x32xf32>
    %83 = arith.mulf %82, %81 : vector<8x32xf32>
    %84 = math.tanh %83 : vector<8x32xf32>
    %cst_46 = arith.constant 5.000000e-01 : f32
    %85 = vector.broadcast %cst_46 : f32 to vector<8x32xf32>
    %86 = arith.mulf %85, %84 : vector<8x32xf32>
    %cst_47 = arith.constant 5.000000e-01 : f32
    %87 = vector.broadcast %cst_47 : f32 to vector<8x32xf32>
    %88 = arith.addf %86, %87 : vector<8x32xf32>
    %89 = arith.mulf %78, %21 : vector<8x32xf32>
    %90 = arith.mulf %70, %80 : vector<8x32xf32>
    %91 = arith.addf %89, %90 : vector<8x32xf32>
    %92 = math.tanh %91 : vector<8x32xf32>
    %93 = arith.mulf %88, %92 : vector<8x32xf32>
    %c1_i32 = arith.constant 1 : i32
    %c8_i32_48 = arith.constant 8 : i32
    %94 = arith.muli %c1_i32, %c8_i32_48 : i32
    %95 = tpu.assume_multiple %94, 8 : i32
    %96 = arith.index_cast %95 : i32 to index
    %c0_49 = arith.constant 0 : index
    %97 = vector.load %arg10[%96, %c0_49] : memref<64x128xf32, #tpu.memory_space<vmem>>, vector<8x128xf32>
    %cst_50 = arith.constant dense<0.000000e+00> : vector<8x128xf32>
    %98 = tpu.matmul %58, %11, %cst_50 {dimension_numbers = #tpu.dot_dimension_numbers<[1], [0], [0], [1], [0, 0, 1, 1], [], []>} : vector<8x32xf32>, vector<32x128xf32>, vector<8x128xf32> -> vector<8x128xf32>
    %99 = arith.addf %97, %98 : vector<8x128xf32>
    %100 = vector.extract_strided_slice %99 {offsets = [0, 0], sizes = [8, 32], strides = [1, 1]} : vector<8x128xf32> to vector<8x32xf32>
    %cst_51 = arith.constant 5.000000e-01 : f32
    %101 = vector.broadcast %cst_51 : f32 to vector<8x32xf32>
    %102 = arith.mulf %101, %100 : vector<8x32xf32>
    %103 = math.tanh %102 : vector<8x32xf32>
    %cst_52 = arith.constant 5.000000e-01 : f32
    %104 = vector.broadcast %cst_52 : f32 to vector<8x32xf32>
    %105 = arith.mulf %104, %103 : vector<8x32xf32>
    %cst_53 = arith.constant 5.000000e-01 : f32
    %106 = vector.broadcast %cst_53 : f32 to vector<8x32xf32>
    %107 = arith.addf %105, %106 : vector<8x32xf32>
    %108 = vector.extract_strided_slice %99 {offsets = [0, 32], sizes = [8, 32], strides = [1, 1]} : vector<8x128xf32> to vector<8x32xf32>
    %cst_54 = arith.constant 5.000000e-01 : f32
    %109 = vector.broadcast %cst_54 : f32 to vector<8x32xf32>
    %110 = arith.mulf %109, %108 : vector<8x32xf32>
    %111 = math.tanh %110 : vector<8x32xf32>
    %cst_55 = arith.constant 5.000000e-01 : f32
    %112 = vector.broadcast %cst_55 : f32 to vector<8x32xf32>
    %113 = arith.mulf %112, %111 : vector<8x32xf32>
    %cst_56 = arith.constant 5.000000e-01 : f32
    %114 = vector.broadcast %cst_56 : f32 to vector<8x32xf32>
    %115 = arith.addf %113, %114 : vector<8x32xf32>
    %116 = vector.extract_strided_slice %99 {offsets = [0, 64], sizes = [8, 32], strides = [1, 1]} : vector<8x128xf32> to vector<8x32xf32>
    %117 = math.tanh %116 : vector<8x32xf32>
    %118 = vector.extract_strided_slice %99 {offsets = [0, 96], sizes = [8, 32], strides = [1, 1]} : vector<8x128xf32> to vector<8x32xf32>
    %cst_57 = arith.constant 5.000000e-01 : f32
    %119 = vector.broadcast %cst_57 : f32 to vector<8x32xf32>
    %120 = arith.mulf %119, %118 : vector<8x32xf32>
    %121 = math.tanh %120 : vector<8x32xf32>
    %cst_58 = arith.constant 5.000000e-01 : f32
    %122 = vector.broadcast %cst_58 : f32 to vector<8x32xf32>
    %123 = arith.mulf %122, %121 : vector<8x32xf32>
    %cst_59 = arith.constant 5.000000e-01 : f32
    %124 = vector.broadcast %cst_59 : f32 to vector<8x32xf32>
    %125 = arith.addf %123, %124 : vector<8x32xf32>
    %126 = arith.mulf %115, %56 : vector<8x32xf32>
    %127 = arith.mulf %107, %117 : vector<8x32xf32>
    %128 = arith.addf %126, %127 : vector<8x32xf32>
    %129 = math.tanh %128 : vector<8x32xf32>
    %130 = arith.mulf %125, %129 : vector<8x32xf32>
    %131 = tpu.concatenate %130, %93 in 1 : vector<8x32xf32>, vector<8x32xf32> -> vector<8x64xf32>
    %cst_60 = arith.constant dense<0.000000e+00> : vector<8x128xf32>
    %132 = tpu.matmul %131, %12, %cst_60 {dimension_numbers = #tpu.dot_dimension_numbers<[1], [0], [0], [1], [0, 0, 1, 1], [], []>} : vector<8x64xf32>, vector<64x128xf32>, vector<8x128xf32> -> vector<8x128xf32>
    %133 = vector.broadcast %13 : vector<1x128xf32> to vector<8x128xf32>
    %134 = arith.addf %132, %133 : vector<8x128xf32>
    %135 = vector.extract_strided_slice %134 {offsets = [0, 0], sizes = [8, 32], strides = [1, 1]} : vector<8x128xf32> to vector<8x32xf32>
    %cst_61 = arith.constant 5.000000e-01 : f32
    %136 = vector.broadcast %cst_61 : f32 to vector<8x32xf32>
    %137 = arith.mulf %136, %135 : vector<8x32xf32>
    %138 = math.tanh %137 : vector<8x32xf32>
    %cst_62 = arith.constant 5.000000e-01 : f32
    %139 = vector.broadcast %cst_62 : f32 to vector<8x32xf32>
    %140 = arith.mulf %139, %138 : vector<8x32xf32>
    %cst_63 = arith.constant 5.000000e-01 : f32
    %141 = vector.broadcast %cst_63 : f32 to vector<8x32xf32>
    %142 = arith.addf %140, %141 : vector<8x32xf32>
    %143 = vector.extract_strided_slice %134 {offsets = [0, 32], sizes = [8, 32], strides = [1, 1]} : vector<8x128xf32> to vector<8x32xf32>
    %cst_64 = arith.constant 5.000000e-01 : f32
    %144 = vector.broadcast %cst_64 : f32 to vector<8x32xf32>
    %145 = arith.mulf %144, %143 : vector<8x32xf32>
    %146 = math.tanh %145 : vector<8x32xf32>
    %cst_65 = arith.constant 5.000000e-01 : f32
    %147 = vector.broadcast %cst_65 : f32 to vector<8x32xf32>
    %148 = arith.mulf %147, %146 : vector<8x32xf32>
    %cst_66 = arith.constant 5.000000e-01 : f32
    %149 = vector.broadcast %cst_66 : f32 to vector<8x32xf32>
    %150 = arith.addf %148, %149 : vector<8x32xf32>
    %151 = vector.extract_strided_slice %134 {offsets = [0, 64], sizes = [8, 32], strides = [1, 1]} : vector<8x128xf32> to vector<8x32xf32>
    %152 = math.tanh %151 : vector<8x32xf32>
    %153 = vector.extract_strided_slice %134 {offsets = [0, 96], sizes = [8, 32], strides = [1, 1]} : vector<8x128xf32> to vector<8x32xf32>
    %cst_67 = arith.constant 5.000000e-01 : f32
    %154 = vector.broadcast %cst_67 : f32 to vector<8x32xf32>
    %155 = arith.mulf %154, %153 : vector<8x32xf32>
    %156 = math.tanh %155 : vector<8x32xf32>
    %cst_68 = arith.constant 5.000000e-01 : f32
    %157 = vector.broadcast %cst_68 : f32 to vector<8x32xf32>
    %158 = arith.mulf %157, %156 : vector<8x32xf32>
    %cst_69 = arith.constant 5.000000e-01 : f32
    %159 = vector.broadcast %cst_69 : f32 to vector<8x32xf32>
    %160 = arith.addf %158, %159 : vector<8x32xf32>
    %161 = arith.mulf %150, %91 : vector<8x32xf32>
    %162 = arith.mulf %142, %152 : vector<8x32xf32>
    %163 = arith.addf %161, %162 : vector<8x32xf32>
    %164 = math.tanh %163 : vector<8x32xf32>
    %165 = arith.mulf %160, %164 : vector<8x32xf32>
    %c2_i32 = arith.constant 2 : i32
    %c8_i32_70 = arith.constant 8 : i32
    %166 = arith.muli %c2_i32, %c8_i32_70 : i32
    %167 = tpu.assume_multiple %166, 8 : i32
    %168 = arith.index_cast %167 : i32 to index
    %c0_71 = arith.constant 0 : index
    %169 = vector.load %arg10[%168, %c0_71] : memref<64x128xf32, #tpu.memory_space<vmem>>, vector<8x128xf32>
    %cst_72 = arith.constant dense<0.000000e+00> : vector<8x128xf32>
    %170 = tpu.matmul %130, %11, %cst_72 {dimension_numbers = #tpu.dot_dimension_numbers<[1], [0], [0], [1], [0, 0, 1, 1], [], []>} : vector<8x32xf32>, vector<32x128xf32>, vector<8x128xf32> -> vector<8x128xf32>
    %171 = arith.addf %169, %170 : vector<8x128xf32>
    %172 = vector.extract_strided_slice %171 {offsets = [0, 0], sizes = [8, 32], strides = [1, 1]} : vector<8x128xf32> to vector<8x32xf32>
    %cst_73 = arith.constant 5.000000e-01 : f32
    %173 = vector.broadcast %cst_73 : f32 to vector<8x32xf32>
    %174 = arith.mulf %173, %172 : vector<8x32xf32>
    %175 = math.tanh %174 : vector<8x32xf32>
    %cst_74 = arith.constant 5.000000e-01 : f32
    %176 = vector.broadcast %cst_74 : f32 to vector<8x32xf32>
    %177 = arith.mulf %176, %175 : vector<8x32xf32>
    %cst_75 = arith.constant 5.000000e-01 : f32
    %178 = vector.broadcast %cst_75 : f32 to vector<8x32xf32>
    %179 = arith.addf %177, %178 : vector<8x32xf32>
    %180 = vector.extract_strided_slice %171 {offsets = [0, 32], sizes = [8, 32], strides = [1, 1]} : vector<8x128xf32> to vector<8x32xf32>
    %cst_76 = arith.constant 5.000000e-01 : f32
    %181 = vector.broadcast %cst_76 : f32 to vector<8x32xf32>
    %182 = arith.mulf %181, %180 : vector<8x32xf32>
    %183 = math.tanh %182 : vector<8x32xf32>
    %cst_77 = arith.constant 5.000000e-01 : f32
    %184 = vector.broadcast %cst_77 : f32 to vector<8x32xf32>
    %185 = arith.mulf %184, %183 : vector<8x32xf32>
    %cst_78 = arith.constant 5.000000e-01 : f32
    %186 = vector.broadcast %cst_78 : f32 to vector<8x32xf32>
    %187 = arith.addf %185, %186 : vector<8x32xf32>
    %188 = vector.extract_strided_slice %171 {offsets = [0, 64], sizes = [8, 32], strides = [1, 1]} : vector<8x128xf32> to vector<8x32xf32>
    %189 = math.tanh %188 : vector<8x32xf32>
    %190 = vector.extract_strided_slice %171 {offsets = [0, 96], sizes = [8, 32], strides = [1, 1]} : vector<8x128xf32> to vector<8x32xf32>
    %cst_79 = arith.constant 5.000000e-01 : f32
    %191 = vector.broadcast %cst_79 : f32 to vector<8x32xf32>
    %192 = arith.mulf %191, %190 : vector<8x32xf32>
    %193 = math.tanh %192 : vector<8x32xf32>
    %cst_80 = arith.constant 5.000000e-01 : f32
    %194 = vector.broadcast %cst_80 : f32 to vector<8x32xf32>
    %195 = arith.mulf %194, %193 : vector<8x32xf32>
    %cst_81 = arith.constant 5.000000e-01 : f32
    %196 = vector.broadcast %cst_81 : f32 to vector<8x32xf32>
    %197 = arith.addf %195, %196 : vector<8x32xf32>
    %198 = arith.mulf %187, %128 : vector<8x32xf32>
    %199 = arith.mulf %179, %189 : vector<8x32xf32>
    %200 = arith.addf %198, %199 : vector<8x32xf32>
    %201 = math.tanh %200 : vector<8x32xf32>
    %202 = arith.mulf %197, %201 : vector<8x32xf32>
    %203 = tpu.concatenate %202, %165 in 1 : vector<8x32xf32>, vector<8x32xf32> -> vector<8x64xf32>
    %cst_82 = arith.constant dense<0.000000e+00> : vector<8x128xf32>
    %204 = tpu.matmul %203, %12, %cst_82 {dimension_numbers = #tpu.dot_dimension_numbers<[1], [0], [0], [1], [0, 0, 1, 1], [], []>} : vector<8x64xf32>, vector<64x128xf32>, vector<8x128xf32> -> vector<8x128xf32>
    %205 = vector.broadcast %13 : vector<1x128xf32> to vector<8x128xf32>
    %206 = arith.addf %204, %205 : vector<8x128xf32>
    %207 = vector.extract_strided_slice %206 {offsets = [0, 0], sizes = [8, 32], strides = [1, 1]} : vector<8x128xf32> to vector<8x32xf32>
    %cst_83 = arith.constant 5.000000e-01 : f32
    %208 = vector.broadcast %cst_83 : f32 to vector<8x32xf32>
    %209 = arith.mulf %208, %207 : vector<8x32xf32>
    %210 = math.tanh %209 : vector<8x32xf32>
    %cst_84 = arith.constant 5.000000e-01 : f32
    %211 = vector.broadcast %cst_84 : f32 to vector<8x32xf32>
    %212 = arith.mulf %211, %210 : vector<8x32xf32>
    %cst_85 = arith.constant 5.000000e-01 : f32
    %213 = vector.broadcast %cst_85 : f32 to vector<8x32xf32>
    %214 = arith.addf %212, %213 : vector<8x32xf32>
    %215 = vector.extract_strided_slice %206 {offsets = [0, 32], sizes = [8, 32], strides = [1, 1]} : vector<8x128xf32> to vector<8x32xf32>
    %cst_86 = arith.constant 5.000000e-01 : f32
    %216 = vector.broadcast %cst_86 : f32 to vector<8x32xf32>
    %217 = arith.mulf %216, %215 : vector<8x32xf32>
    %218 = math.tanh %217 : vector<8x32xf32>
    %cst_87 = arith.constant 5.000000e-01 : f32
    %219 = vector.broadcast %cst_87 : f32 to vector<8x32xf32>
    %220 = arith.mulf %219, %218 : vector<8x32xf32>
    %cst_88 = arith.constant 5.000000e-01 : f32
    %221 = vector.broadcast %cst_88 : f32 to vector<8x32xf32>
    %222 = arith.addf %220, %221 : vector<8x32xf32>
    %223 = vector.extract_strided_slice %206 {offsets = [0, 64], sizes = [8, 32], strides = [1, 1]} : vector<8x128xf32> to vector<8x32xf32>
    %224 = math.tanh %223 : vector<8x32xf32>
    %225 = vector.extract_strided_slice %206 {offsets = [0, 96], sizes = [8, 32], strides = [1, 1]} : vector<8x128xf32> to vector<8x32xf32>
    %cst_89 = arith.constant 5.000000e-01 : f32
    %226 = vector.broadcast %cst_89 : f32 to vector<8x32xf32>
    %227 = arith.mulf %226, %225 : vector<8x32xf32>
    %228 = math.tanh %227 : vector<8x32xf32>
    %cst_90 = arith.constant 5.000000e-01 : f32
    %229 = vector.broadcast %cst_90 : f32 to vector<8x32xf32>
    %230 = arith.mulf %229, %228 : vector<8x32xf32>
    %cst_91 = arith.constant 5.000000e-01 : f32
    %231 = vector.broadcast %cst_91 : f32 to vector<8x32xf32>
    %232 = arith.addf %230, %231 : vector<8x32xf32>
    %233 = arith.mulf %222, %163 : vector<8x32xf32>
    %234 = arith.mulf %214, %224 : vector<8x32xf32>
    %235 = arith.addf %233, %234 : vector<8x32xf32>
    %236 = math.tanh %235 : vector<8x32xf32>
    %237 = arith.mulf %232, %236 : vector<8x32xf32>
    %c3_i32 = arith.constant 3 : i32
    %c8_i32_92 = arith.constant 8 : i32
    %238 = arith.muli %c3_i32, %c8_i32_92 : i32
    %239 = tpu.assume_multiple %238, 8 : i32
    %240 = arith.index_cast %239 : i32 to index
    %c0_93 = arith.constant 0 : index
    %241 = vector.load %arg10[%240, %c0_93] : memref<64x128xf32, #tpu.memory_space<vmem>>, vector<8x128xf32>
    %cst_94 = arith.constant dense<0.000000e+00> : vector<8x128xf32>
    %242 = tpu.matmul %202, %11, %cst_94 {dimension_numbers = #tpu.dot_dimension_numbers<[1], [0], [0], [1], [0, 0, 1, 1], [], []>} : vector<8x32xf32>, vector<32x128xf32>, vector<8x128xf32> -> vector<8x128xf32>
    %243 = arith.addf %241, %242 : vector<8x128xf32>
    %244 = vector.extract_strided_slice %243 {offsets = [0, 0], sizes = [8, 32], strides = [1, 1]} : vector<8x128xf32> to vector<8x32xf32>
    %cst_95 = arith.constant 5.000000e-01 : f32
    %245 = vector.broadcast %cst_95 : f32 to vector<8x32xf32>
    %246 = arith.mulf %245, %244 : vector<8x32xf32>
    %247 = math.tanh %246 : vector<8x32xf32>
    %cst_96 = arith.constant 5.000000e-01 : f32
    %248 = vector.broadcast %cst_96 : f32 to vector<8x32xf32>
    %249 = arith.mulf %248, %247 : vector<8x32xf32>
    %cst_97 = arith.constant 5.000000e-01 : f32
    %250 = vector.broadcast %cst_97 : f32 to vector<8x32xf32>
    %251 = arith.addf %249, %250 : vector<8x32xf32>
    %252 = vector.extract_strided_slice %243 {offsets = [0, 32], sizes = [8, 32], strides = [1, 1]} : vector<8x128xf32> to vector<8x32xf32>
    %cst_98 = arith.constant 5.000000e-01 : f32
    %253 = vector.broadcast %cst_98 : f32 to vector<8x32xf32>
    %254 = arith.mulf %253, %252 : vector<8x32xf32>
    %255 = math.tanh %254 : vector<8x32xf32>
    %cst_99 = arith.constant 5.000000e-01 : f32
    %256 = vector.broadcast %cst_99 : f32 to vector<8x32xf32>
    %257 = arith.mulf %256, %255 : vector<8x32xf32>
    %cst_100 = arith.constant 5.000000e-01 : f32
    %258 = vector.broadcast %cst_100 : f32 to vector<8x32xf32>
    %259 = arith.addf %257, %258 : vector<8x32xf32>
    %260 = vector.extract_strided_slice %243 {offsets = [0, 64], sizes = [8, 32], strides = [1, 1]} : vector<8x128xf32> to vector<8x32xf32>
    %261 = math.tanh %260 : vector<8x32xf32>
    %262 = vector.extract_strided_slice %243 {offsets = [0, 96], sizes = [8, 32], strides = [1, 1]} : vector<8x128xf32> to vector<8x32xf32>
    %cst_101 = arith.constant 5.000000e-01 : f32
    %263 = vector.broadcast %cst_101 : f32 to vector<8x32xf32>
    %264 = arith.mulf %263, %262 : vector<8x32xf32>
    %265 = math.tanh %264 : vector<8x32xf32>
    %cst_102 = arith.constant 5.000000e-01 : f32
    %266 = vector.broadcast %cst_102 : f32 to vector<8x32xf32>
    %267 = arith.mulf %266, %265 : vector<8x32xf32>
    %cst_103 = arith.constant 5.000000e-01 : f32
    %268 = vector.broadcast %cst_103 : f32 to vector<8x32xf32>
    %269 = arith.addf %267, %268 : vector<8x32xf32>
    %270 = arith.mulf %259, %200 : vector<8x32xf32>
    %271 = arith.mulf %251, %261 : vector<8x32xf32>
    %272 = arith.addf %270, %271 : vector<8x32xf32>
    %273 = math.tanh %272 : vector<8x32xf32>
    %274 = arith.mulf %269, %273 : vector<8x32xf32>
    %275 = tpu.concatenate %274, %237 in 1 : vector<8x32xf32>, vector<8x32xf32> -> vector<8x64xf32>
    %cst_104 = arith.constant dense<0.000000e+00> : vector<8x128xf32>
    %276 = tpu.matmul %275, %12, %cst_104 {dimension_numbers = #tpu.dot_dimension_numbers<[1], [0], [0], [1], [0, 0, 1, 1], [], []>} : vector<8x64xf32>, vector<64x128xf32>, vector<8x128xf32> -> vector<8x128xf32>
    %277 = vector.broadcast %13 : vector<1x128xf32> to vector<8x128xf32>
    %278 = arith.addf %276, %277 : vector<8x128xf32>
    %279 = vector.extract_strided_slice %278 {offsets = [0, 0], sizes = [8, 32], strides = [1, 1]} : vector<8x128xf32> to vector<8x32xf32>
    %cst_105 = arith.constant 5.000000e-01 : f32
    %280 = vector.broadcast %cst_105 : f32 to vector<8x32xf32>
    %281 = arith.mulf %280, %279 : vector<8x32xf32>
    %282 = math.tanh %281 : vector<8x32xf32>
    %cst_106 = arith.constant 5.000000e-01 : f32
    %283 = vector.broadcast %cst_106 : f32 to vector<8x32xf32>
    %284 = arith.mulf %283, %282 : vector<8x32xf32>
    %cst_107 = arith.constant 5.000000e-01 : f32
    %285 = vector.broadcast %cst_107 : f32 to vector<8x32xf32>
    %286 = arith.addf %284, %285 : vector<8x32xf32>
    %287 = vector.extract_strided_slice %278 {offsets = [0, 32], sizes = [8, 32], strides = [1, 1]} : vector<8x128xf32> to vector<8x32xf32>
    %cst_108 = arith.constant 5.000000e-01 : f32
    %288 = vector.broadcast %cst_108 : f32 to vector<8x32xf32>
    %289 = arith.mulf %288, %287 : vector<8x32xf32>
    %290 = math.tanh %289 : vector<8x32xf32>
    %cst_109 = arith.constant 5.000000e-01 : f32
    %291 = vector.broadcast %cst_109 : f32 to vector<8x32xf32>
    %292 = arith.mulf %291, %290 : vector<8x32xf32>
    %cst_110 = arith.constant 5.000000e-01 : f32
    %293 = vector.broadcast %cst_110 : f32 to vector<8x32xf32>
    %294 = arith.addf %292, %293 : vector<8x32xf32>
    %295 = vector.extract_strided_slice %278 {offsets = [0, 64], sizes = [8, 32], strides = [1, 1]} : vector<8x128xf32> to vector<8x32xf32>
    %296 = math.tanh %295 : vector<8x32xf32>
    %297 = vector.extract_strided_slice %278 {offsets = [0, 96], sizes = [8, 32], strides = [1, 1]} : vector<8x128xf32> to vector<8x32xf32>
    %cst_111 = arith.constant 5.000000e-01 : f32
    %298 = vector.broadcast %cst_111 : f32 to vector<8x32xf32>
    %299 = arith.mulf %298, %297 : vector<8x32xf32>
    %300 = math.tanh %299 : vector<8x32xf32>
    %cst_112 = arith.constant 5.000000e-01 : f32
    %301 = vector.broadcast %cst_112 : f32 to vector<8x32xf32>
    %302 = arith.mulf %301, %300 : vector<8x32xf32>
    %cst_113 = arith.constant 5.000000e-01 : f32
    %303 = vector.broadcast %cst_113 : f32 to vector<8x32xf32>
    %304 = arith.addf %302, %303 : vector<8x32xf32>
    %305 = arith.mulf %294, %235 : vector<8x32xf32>
    %306 = arith.mulf %286, %296 : vector<8x32xf32>
    %307 = arith.addf %305, %306 : vector<8x32xf32>
    %308 = math.tanh %307 : vector<8x32xf32>
    %309 = arith.mulf %304, %308 : vector<8x32xf32>
    %c4_i32 = arith.constant 4 : i32
    %c8_i32_114 = arith.constant 8 : i32
    %310 = arith.muli %c4_i32, %c8_i32_114 : i32
    %311 = tpu.assume_multiple %310, 8 : i32
    %312 = arith.index_cast %311 : i32 to index
    %c0_115 = arith.constant 0 : index
    %313 = vector.load %arg10[%312, %c0_115] : memref<64x128xf32, #tpu.memory_space<vmem>>, vector<8x128xf32>
    %cst_116 = arith.constant dense<0.000000e+00> : vector<8x128xf32>
    %314 = tpu.matmul %274, %11, %cst_116 {dimension_numbers = #tpu.dot_dimension_numbers<[1], [0], [0], [1], [0, 0, 1, 1], [], []>} : vector<8x32xf32>, vector<32x128xf32>, vector<8x128xf32> -> vector<8x128xf32>
    %315 = arith.addf %313, %314 : vector<8x128xf32>
    %316 = vector.extract_strided_slice %315 {offsets = [0, 0], sizes = [8, 32], strides = [1, 1]} : vector<8x128xf32> to vector<8x32xf32>
    %cst_117 = arith.constant 5.000000e-01 : f32
    %317 = vector.broadcast %cst_117 : f32 to vector<8x32xf32>
    %318 = arith.mulf %317, %316 : vector<8x32xf32>
    %319 = math.tanh %318 : vector<8x32xf32>
    %cst_118 = arith.constant 5.000000e-01 : f32
    %320 = vector.broadcast %cst_118 : f32 to vector<8x32xf32>
    %321 = arith.mulf %320, %319 : vector<8x32xf32>
    %cst_119 = arith.constant 5.000000e-01 : f32
    %322 = vector.broadcast %cst_119 : f32 to vector<8x32xf32>
    %323 = arith.addf %321, %322 : vector<8x32xf32>
    %324 = vector.extract_strided_slice %315 {offsets = [0, 32], sizes = [8, 32], strides = [1, 1]} : vector<8x128xf32> to vector<8x32xf32>
    %cst_120 = arith.constant 5.000000e-01 : f32
    %325 = vector.broadcast %cst_120 : f32 to vector<8x32xf32>
    %326 = arith.mulf %325, %324 : vector<8x32xf32>
    %327 = math.tanh %326 : vector<8x32xf32>
    %cst_121 = arith.constant 5.000000e-01 : f32
    %328 = vector.broadcast %cst_121 : f32 to vector<8x32xf32>
    %329 = arith.mulf %328, %327 : vector<8x32xf32>
    %cst_122 = arith.constant 5.000000e-01 : f32
    %330 = vector.broadcast %cst_122 : f32 to vector<8x32xf32>
    %331 = arith.addf %329, %330 : vector<8x32xf32>
    %332 = vector.extract_strided_slice %315 {offsets = [0, 64], sizes = [8, 32], strides = [1, 1]} : vector<8x128xf32> to vector<8x32xf32>
    %333 = math.tanh %332 : vector<8x32xf32>
    %334 = vector.extract_strided_slice %315 {offsets = [0, 96], sizes = [8, 32], strides = [1, 1]} : vector<8x128xf32> to vector<8x32xf32>
    %cst_123 = arith.constant 5.000000e-01 : f32
    %335 = vector.broadcast %cst_123 : f32 to vector<8x32xf32>
    %336 = arith.mulf %335, %334 : vector<8x32xf32>
    %337 = math.tanh %336 : vector<8x32xf32>
    %cst_124 = arith.constant 5.000000e-01 : f32
    %338 = vector.broadcast %cst_124 : f32 to vector<8x32xf32>
    %339 = arith.mulf %338, %337 : vector<8x32xf32>
    %cst_125 = arith.constant 5.000000e-01 : f32
    %340 = vector.broadcast %cst_125 : f32 to vector<8x32xf32>
    %341 = arith.addf %339, %340 : vector<8x32xf32>
    %342 = arith.mulf %331, %272 : vector<8x32xf32>
    %343 = arith.mulf %323, %333 : vector<8x32xf32>
    %344 = arith.addf %342, %343 : vector<8x32xf32>
    %345 = math.tanh %344 : vector<8x32xf32>
    %346 = arith.mulf %341, %345 : vector<8x32xf32>
    %347 = tpu.concatenate %346, %309 in 1 : vector<8x32xf32>, vector<8x32xf32> -> vector<8x64xf32>
    %cst_126 = arith.constant dense<0.000000e+00> : vector<8x128xf32>
    %348 = tpu.matmul %347, %12, %cst_126 {dimension_numbers = #tpu.dot_dimension_numbers<[1], [0], [0], [1], [0, 0, 1, 1], [], []>} : vector<8x64xf32>, vector<64x128xf32>, vector<8x128xf32> -> vector<8x128xf32>
    %349 = vector.broadcast %13 : vector<1x128xf32> to vector<8x128xf32>
    %350 = arith.addf %348, %349 : vector<8x128xf32>
    %351 = vector.extract_strided_slice %350 {offsets = [0, 0], sizes = [8, 32], strides = [1, 1]} : vector<8x128xf32> to vector<8x32xf32>
    %cst_127 = arith.constant 5.000000e-01 : f32
    %352 = vector.broadcast %cst_127 : f32 to vector<8x32xf32>
    %353 = arith.mulf %352, %351 : vector<8x32xf32>
    %354 = math.tanh %353 : vector<8x32xf32>
    %cst_128 = arith.constant 5.000000e-01 : f32
    %355 = vector.broadcast %cst_128 : f32 to vector<8x32xf32>
    %356 = arith.mulf %355, %354 : vector<8x32xf32>
    %cst_129 = arith.constant 5.000000e-01 : f32
    %357 = vector.broadcast %cst_129 : f32 to vector<8x32xf32>
    %358 = arith.addf %356, %357 : vector<8x32xf32>
    %359 = vector.extract_strided_slice %350 {offsets = [0, 32], sizes = [8, 32], strides = [1, 1]} : vector<8x128xf32> to vector<8x32xf32>
    %cst_130 = arith.constant 5.000000e-01 : f32
    %360 = vector.broadcast %cst_130 : f32 to vector<8x32xf32>
    %361 = arith.mulf %360, %359 : vector<8x32xf32>
    %362 = math.tanh %361 : vector<8x32xf32>
    %cst_131 = arith.constant 5.000000e-01 : f32
    %363 = vector.broadcast %cst_131 : f32 to vector<8x32xf32>
    %364 = arith.mulf %363, %362 : vector<8x32xf32>
    %cst_132 = arith.constant 5.000000e-01 : f32
    %365 = vector.broadcast %cst_132 : f32 to vector<8x32xf32>
    %366 = arith.addf %364, %365 : vector<8x32xf32>
    %367 = vector.extract_strided_slice %350 {offsets = [0, 64], sizes = [8, 32], strides = [1, 1]} : vector<8x128xf32> to vector<8x32xf32>
    %368 = math.tanh %367 : vector<8x32xf32>
    %369 = vector.extract_strided_slice %350 {offsets = [0, 96], sizes = [8, 32], strides = [1, 1]} : vector<8x128xf32> to vector<8x32xf32>
    %cst_133 = arith.constant 5.000000e-01 : f32
    %370 = vector.broadcast %cst_133 : f32 to vector<8x32xf32>
    %371 = arith.mulf %370, %369 : vector<8x32xf32>
    %372 = math.tanh %371 : vector<8x32xf32>
    %cst_134 = arith.constant 5.000000e-01 : f32
    %373 = vector.broadcast %cst_134 : f32 to vector<8x32xf32>
    %374 = arith.mulf %373, %372 : vector<8x32xf32>
    %cst_135 = arith.constant 5.000000e-01 : f32
    %375 = vector.broadcast %cst_135 : f32 to vector<8x32xf32>
    %376 = arith.addf %374, %375 : vector<8x32xf32>
    %377 = arith.mulf %366, %307 : vector<8x32xf32>
    %378 = arith.mulf %358, %368 : vector<8x32xf32>
    %379 = arith.addf %377, %378 : vector<8x32xf32>
    %380 = math.tanh %379 : vector<8x32xf32>
    %381 = arith.mulf %376, %380 : vector<8x32xf32>
    %c5_i32 = arith.constant 5 : i32
    %c8_i32_136 = arith.constant 8 : i32
    %382 = arith.muli %c5_i32, %c8_i32_136 : i32
    %383 = tpu.assume_multiple %382, 8 : i32
    %384 = arith.index_cast %383 : i32 to index
    %c0_137 = arith.constant 0 : index
    %385 = vector.load %arg10[%384, %c0_137] : memref<64x128xf32, #tpu.memory_space<vmem>>, vector<8x128xf32>
    %cst_138 = arith.constant dense<0.000000e+00> : vector<8x128xf32>
    %386 = tpu.matmul %346, %11, %cst_138 {dimension_numbers = #tpu.dot_dimension_numbers<[1], [0], [0], [1], [0, 0, 1, 1], [], []>} : vector<8x32xf32>, vector<32x128xf32>, vector<8x128xf32> -> vector<8x128xf32>
    %387 = arith.addf %385, %386 : vector<8x128xf32>
    %388 = vector.extract_strided_slice %387 {offsets = [0, 0], sizes = [8, 32], strides = [1, 1]} : vector<8x128xf32> to vector<8x32xf32>
    %cst_139 = arith.constant 5.000000e-01 : f32
    %389 = vector.broadcast %cst_139 : f32 to vector<8x32xf32>
    %390 = arith.mulf %389, %388 : vector<8x32xf32>
    %391 = math.tanh %390 : vector<8x32xf32>
    %cst_140 = arith.constant 5.000000e-01 : f32
    %392 = vector.broadcast %cst_140 : f32 to vector<8x32xf32>
    %393 = arith.mulf %392, %391 : vector<8x32xf32>
    %cst_141 = arith.constant 5.000000e-01 : f32
    %394 = vector.broadcast %cst_141 : f32 to vector<8x32xf32>
    %395 = arith.addf %393, %394 : vector<8x32xf32>
    %396 = vector.extract_strided_slice %387 {offsets = [0, 32], sizes = [8, 32], strides = [1, 1]} : vector<8x128xf32> to vector<8x32xf32>
    %cst_142 = arith.constant 5.000000e-01 : f32
    %397 = vector.broadcast %cst_142 : f32 to vector<8x32xf32>
    %398 = arith.mulf %397, %396 : vector<8x32xf32>
    %399 = math.tanh %398 : vector<8x32xf32>
    %cst_143 = arith.constant 5.000000e-01 : f32
    %400 = vector.broadcast %cst_143 : f32 to vector<8x32xf32>
    %401 = arith.mulf %400, %399 : vector<8x32xf32>
    %cst_144 = arith.constant 5.000000e-01 : f32
    %402 = vector.broadcast %cst_144 : f32 to vector<8x32xf32>
    %403 = arith.addf %401, %402 : vector<8x32xf32>
    %404 = vector.extract_strided_slice %387 {offsets = [0, 64], sizes = [8, 32], strides = [1, 1]} : vector<8x128xf32> to vector<8x32xf32>
    %405 = math.tanh %404 : vector<8x32xf32>
    %406 = vector.extract_strided_slice %387 {offsets = [0, 96], sizes = [8, 32], strides = [1, 1]} : vector<8x128xf32> to vector<8x32xf32>
    %cst_145 = arith.constant 5.000000e-01 : f32
    %407 = vector.broadcast %cst_145 : f32 to vector<8x32xf32>
    %408 = arith.mulf %407, %406 : vector<8x32xf32>
    %409 = math.tanh %408 : vector<8x32xf32>
    %cst_146 = arith.constant 5.000000e-01 : f32
    %410 = vector.broadcast %cst_146 : f32 to vector<8x32xf32>
    %411 = arith.mulf %410, %409 : vector<8x32xf32>
    %cst_147 = arith.constant 5.000000e-01 : f32
    %412 = vector.broadcast %cst_147 : f32 to vector<8x32xf32>
    %413 = arith.addf %411, %412 : vector<8x32xf32>
    %414 = arith.mulf %403, %344 : vector<8x32xf32>
    %415 = arith.mulf %395, %405 : vector<8x32xf32>
    %416 = arith.addf %414, %415 : vector<8x32xf32>
    %417 = math.tanh %416 : vector<8x32xf32>
    %418 = arith.mulf %413, %417 : vector<8x32xf32>
    %419 = tpu.concatenate %418, %381 in 1 : vector<8x32xf32>, vector<8x32xf32> -> vector<8x64xf32>
    %cst_148 = arith.constant dense<0.000000e+00> : vector<8x128xf32>
    %420 = tpu.matmul %419, %12, %cst_148 {dimension_numbers = #tpu.dot_dimension_numbers<[1], [0], [0], [1], [0, 0, 1, 1], [], []>} : vector<8x64xf32>, vector<64x128xf32>, vector<8x128xf32> -> vector<8x128xf32>
    %421 = vector.broadcast %13 : vector<1x128xf32> to vector<8x128xf32>
    %422 = arith.addf %420, %421 : vector<8x128xf32>
    %423 = vector.extract_strided_slice %422 {offsets = [0, 0], sizes = [8, 32], strides = [1, 1]} : vector<8x128xf32> to vector<8x32xf32>
    %cst_149 = arith.constant 5.000000e-01 : f32
    %424 = vector.broadcast %cst_149 : f32 to vector<8x32xf32>
    %425 = arith.mulf %424, %423 : vector<8x32xf32>
    %426 = math.tanh %425 : vector<8x32xf32>
    %cst_150 = arith.constant 5.000000e-01 : f32
    %427 = vector.broadcast %cst_150 : f32 to vector<8x32xf32>
    %428 = arith.mulf %427, %426 : vector<8x32xf32>
    %cst_151 = arith.constant 5.000000e-01 : f32
    %429 = vector.broadcast %cst_151 : f32 to vector<8x32xf32>
    %430 = arith.addf %428, %429 : vector<8x32xf32>
    %431 = vector.extract_strided_slice %422 {offsets = [0, 32], sizes = [8, 32], strides = [1, 1]} : vector<8x128xf32> to vector<8x32xf32>
    %cst_152 = arith.constant 5.000000e-01 : f32
    %432 = vector.broadcast %cst_152 : f32 to vector<8x32xf32>
    %433 = arith.mulf %432, %431 : vector<8x32xf32>
    %434 = math.tanh %433 : vector<8x32xf32>
    %cst_153 = arith.constant 5.000000e-01 : f32
    %435 = vector.broadcast %cst_153 : f32 to vector<8x32xf32>
    %436 = arith.mulf %435, %434 : vector<8x32xf32>
    %cst_154 = arith.constant 5.000000e-01 : f32
    %437 = vector.broadcast %cst_154 : f32 to vector<8x32xf32>
    %438 = arith.addf %436, %437 : vector<8x32xf32>
    %439 = vector.extract_strided_slice %422 {offsets = [0, 64], sizes = [8, 32], strides = [1, 1]} : vector<8x128xf32> to vector<8x32xf32>
    %440 = math.tanh %439 : vector<8x32xf32>
    %441 = vector.extract_strided_slice %422 {offsets = [0, 96], sizes = [8, 32], strides = [1, 1]} : vector<8x128xf32> to vector<8x32xf32>
    %cst_155 = arith.constant 5.000000e-01 : f32
    %442 = vector.broadcast %cst_155 : f32 to vector<8x32xf32>
    %443 = arith.mulf %442, %441 : vector<8x32xf32>
    %444 = math.tanh %443 : vector<8x32xf32>
    %cst_156 = arith.constant 5.000000e-01 : f32
    %445 = vector.broadcast %cst_156 : f32 to vector<8x32xf32>
    %446 = arith.mulf %445, %444 : vector<8x32xf32>
    %cst_157 = arith.constant 5.000000e-01 : f32
    %447 = vector.broadcast %cst_157 : f32 to vector<8x32xf32>
    %448 = arith.addf %446, %447 : vector<8x32xf32>
    %449 = arith.mulf %438, %379 : vector<8x32xf32>
    %450 = arith.mulf %430, %440 : vector<8x32xf32>
    %451 = arith.addf %449, %450 : vector<8x32xf32>
    %452 = math.tanh %451 : vector<8x32xf32>
    %453 = arith.mulf %448, %452 : vector<8x32xf32>
    %c6_i32 = arith.constant 6 : i32
    %c8_i32_158 = arith.constant 8 : i32
    %454 = arith.muli %c6_i32, %c8_i32_158 : i32
    %455 = tpu.assume_multiple %454, 8 : i32
    %456 = arith.index_cast %455 : i32 to index
    %c0_159 = arith.constant 0 : index
    %457 = vector.load %arg10[%456, %c0_159] : memref<64x128xf32, #tpu.memory_space<vmem>>, vector<8x128xf32>
    %cst_160 = arith.constant dense<0.000000e+00> : vector<8x128xf32>
    %458 = tpu.matmul %418, %11, %cst_160 {dimension_numbers = #tpu.dot_dimension_numbers<[1], [0], [0], [1], [0, 0, 1, 1], [], []>} : vector<8x32xf32>, vector<32x128xf32>, vector<8x128xf32> -> vector<8x128xf32>
    %459 = arith.addf %457, %458 : vector<8x128xf32>
    %460 = vector.extract_strided_slice %459 {offsets = [0, 0], sizes = [8, 32], strides = [1, 1]} : vector<8x128xf32> to vector<8x32xf32>
    %cst_161 = arith.constant 5.000000e-01 : f32
    %461 = vector.broadcast %cst_161 : f32 to vector<8x32xf32>
    %462 = arith.mulf %461, %460 : vector<8x32xf32>
    %463 = math.tanh %462 : vector<8x32xf32>
    %cst_162 = arith.constant 5.000000e-01 : f32
    %464 = vector.broadcast %cst_162 : f32 to vector<8x32xf32>
    %465 = arith.mulf %464, %463 : vector<8x32xf32>
    %cst_163 = arith.constant 5.000000e-01 : f32
    %466 = vector.broadcast %cst_163 : f32 to vector<8x32xf32>
    %467 = arith.addf %465, %466 : vector<8x32xf32>
    %468 = vector.extract_strided_slice %459 {offsets = [0, 32], sizes = [8, 32], strides = [1, 1]} : vector<8x128xf32> to vector<8x32xf32>
    %cst_164 = arith.constant 5.000000e-01 : f32
    %469 = vector.broadcast %cst_164 : f32 to vector<8x32xf32>
    %470 = arith.mulf %469, %468 : vector<8x32xf32>
    %471 = math.tanh %470 : vector<8x32xf32>
    %cst_165 = arith.constant 5.000000e-01 : f32
    %472 = vector.broadcast %cst_165 : f32 to vector<8x32xf32>
    %473 = arith.mulf %472, %471 : vector<8x32xf32>
    %cst_166 = arith.constant 5.000000e-01 : f32
    %474 = vector.broadcast %cst_166 : f32 to vector<8x32xf32>
    %475 = arith.addf %473, %474 : vector<8x32xf32>
    %476 = vector.extract_strided_slice %459 {offsets = [0, 64], sizes = [8, 32], strides = [1, 1]} : vector<8x128xf32> to vector<8x32xf32>
    %477 = math.tanh %476 : vector<8x32xf32>
    %478 = vector.extract_strided_slice %459 {offsets = [0, 96], sizes = [8, 32], strides = [1, 1]} : vector<8x128xf32> to vector<8x32xf32>
    %cst_167 = arith.constant 5.000000e-01 : f32
    %479 = vector.broadcast %cst_167 : f32 to vector<8x32xf32>
    %480 = arith.mulf %479, %478 : vector<8x32xf32>
    %481 = math.tanh %480 : vector<8x32xf32>
    %cst_168 = arith.constant 5.000000e-01 : f32
    %482 = vector.broadcast %cst_168 : f32 to vector<8x32xf32>
    %483 = arith.mulf %482, %481 : vector<8x32xf32>
    %cst_169 = arith.constant 5.000000e-01 : f32
    %484 = vector.broadcast %cst_169 : f32 to vector<8x32xf32>
    %485 = arith.addf %483, %484 : vector<8x32xf32>
    %486 = arith.mulf %475, %416 : vector<8x32xf32>
    %487 = arith.mulf %467, %477 : vector<8x32xf32>
    %488 = arith.addf %486, %487 : vector<8x32xf32>
    %489 = math.tanh %488 : vector<8x32xf32>
    %490 = arith.mulf %485, %489 : vector<8x32xf32>
    %491 = tpu.concatenate %490, %453 in 1 : vector<8x32xf32>, vector<8x32xf32> -> vector<8x64xf32>
    %cst_170 = arith.constant dense<0.000000e+00> : vector<8x128xf32>
    %492 = tpu.matmul %491, %12, %cst_170 {dimension_numbers = #tpu.dot_dimension_numbers<[1], [0], [0], [1], [0, 0, 1, 1], [], []>} : vector<8x64xf32>, vector<64x128xf32>, vector<8x128xf32> -> vector<8x128xf32>
    %493 = vector.broadcast %13 : vector<1x128xf32> to vector<8x128xf32>
    %494 = arith.addf %492, %493 : vector<8x128xf32>
    %495 = vector.extract_strided_slice %494 {offsets = [0, 0], sizes = [8, 32], strides = [1, 1]} : vector<8x128xf32> to vector<8x32xf32>
    %cst_171 = arith.constant 5.000000e-01 : f32
    %496 = vector.broadcast %cst_171 : f32 to vector<8x32xf32>
    %497 = arith.mulf %496, %495 : vector<8x32xf32>
    %498 = math.tanh %497 : vector<8x32xf32>
    %cst_172 = arith.constant 5.000000e-01 : f32
    %499 = vector.broadcast %cst_172 : f32 to vector<8x32xf32>
    %500 = arith.mulf %499, %498 : vector<8x32xf32>
    %cst_173 = arith.constant 5.000000e-01 : f32
    %501 = vector.broadcast %cst_173 : f32 to vector<8x32xf32>
    %502 = arith.addf %500, %501 : vector<8x32xf32>
    %503 = vector.extract_strided_slice %494 {offsets = [0, 32], sizes = [8, 32], strides = [1, 1]} : vector<8x128xf32> to vector<8x32xf32>
    %cst_174 = arith.constant 5.000000e-01 : f32
    %504 = vector.broadcast %cst_174 : f32 to vector<8x32xf32>
    %505 = arith.mulf %504, %503 : vector<8x32xf32>
    %506 = math.tanh %505 : vector<8x32xf32>
    %cst_175 = arith.constant 5.000000e-01 : f32
    %507 = vector.broadcast %cst_175 : f32 to vector<8x32xf32>
    %508 = arith.mulf %507, %506 : vector<8x32xf32>
    %cst_176 = arith.constant 5.000000e-01 : f32
    %509 = vector.broadcast %cst_176 : f32 to vector<8x32xf32>
    %510 = arith.addf %508, %509 : vector<8x32xf32>
    %511 = vector.extract_strided_slice %494 {offsets = [0, 64], sizes = [8, 32], strides = [1, 1]} : vector<8x128xf32> to vector<8x32xf32>
    %512 = math.tanh %511 : vector<8x32xf32>
    %513 = vector.extract_strided_slice %494 {offsets = [0, 96], sizes = [8, 32], strides = [1, 1]} : vector<8x128xf32> to vector<8x32xf32>
    %cst_177 = arith.constant 5.000000e-01 : f32
    %514 = vector.broadcast %cst_177 : f32 to vector<8x32xf32>
    %515 = arith.mulf %514, %513 : vector<8x32xf32>
    %516 = math.tanh %515 : vector<8x32xf32>
    %cst_178 = arith.constant 5.000000e-01 : f32
    %517 = vector.broadcast %cst_178 : f32 to vector<8x32xf32>
    %518 = arith.mulf %517, %516 : vector<8x32xf32>
    %cst_179 = arith.constant 5.000000e-01 : f32
    %519 = vector.broadcast %cst_179 : f32 to vector<8x32xf32>
    %520 = arith.addf %518, %519 : vector<8x32xf32>
    %521 = arith.mulf %510, %451 : vector<8x32xf32>
    %522 = arith.mulf %502, %512 : vector<8x32xf32>
    %523 = arith.addf %521, %522 : vector<8x32xf32>
    %524 = math.tanh %523 : vector<8x32xf32>
    %525 = arith.mulf %520, %524 : vector<8x32xf32>
    %c7_i32 = arith.constant 7 : i32
    %c8_i32_180 = arith.constant 8 : i32
    %526 = arith.muli %c7_i32, %c8_i32_180 : i32
    %527 = tpu.assume_multiple %526, 8 : i32
    %528 = arith.index_cast %527 : i32 to index
    %c0_181 = arith.constant 0 : index
    %529 = vector.load %arg10[%528, %c0_181] : memref<64x128xf32, #tpu.memory_space<vmem>>, vector<8x128xf32>
    %cst_182 = arith.constant dense<0.000000e+00> : vector<8x128xf32>
    %530 = tpu.matmul %490, %11, %cst_182 {dimension_numbers = #tpu.dot_dimension_numbers<[1], [0], [0], [1], [0, 0, 1, 1], [], []>} : vector<8x32xf32>, vector<32x128xf32>, vector<8x128xf32> -> vector<8x128xf32>
    %531 = arith.addf %529, %530 : vector<8x128xf32>
    %532 = vector.extract_strided_slice %531 {offsets = [0, 0], sizes = [8, 32], strides = [1, 1]} : vector<8x128xf32> to vector<8x32xf32>
    %cst_183 = arith.constant 5.000000e-01 : f32
    %533 = vector.broadcast %cst_183 : f32 to vector<8x32xf32>
    %534 = arith.mulf %533, %532 : vector<8x32xf32>
    %535 = math.tanh %534 : vector<8x32xf32>
    %cst_184 = arith.constant 5.000000e-01 : f32
    %536 = vector.broadcast %cst_184 : f32 to vector<8x32xf32>
    %537 = arith.mulf %536, %535 : vector<8x32xf32>
    %cst_185 = arith.constant 5.000000e-01 : f32
    %538 = vector.broadcast %cst_185 : f32 to vector<8x32xf32>
    %539 = arith.addf %537, %538 : vector<8x32xf32>
    %540 = vector.extract_strided_slice %531 {offsets = [0, 32], sizes = [8, 32], strides = [1, 1]} : vector<8x128xf32> to vector<8x32xf32>
    %cst_186 = arith.constant 5.000000e-01 : f32
    %541 = vector.broadcast %cst_186 : f32 to vector<8x32xf32>
    %542 = arith.mulf %541, %540 : vector<8x32xf32>
    %543 = math.tanh %542 : vector<8x32xf32>
    %cst_187 = arith.constant 5.000000e-01 : f32
    %544 = vector.broadcast %cst_187 : f32 to vector<8x32xf32>
    %545 = arith.mulf %544, %543 : vector<8x32xf32>
    %cst_188 = arith.constant 5.000000e-01 : f32
    %546 = vector.broadcast %cst_188 : f32 to vector<8x32xf32>
    %547 = arith.addf %545, %546 : vector<8x32xf32>
    %548 = vector.extract_strided_slice %531 {offsets = [0, 64], sizes = [8, 32], strides = [1, 1]} : vector<8x128xf32> to vector<8x32xf32>
    %549 = math.tanh %548 : vector<8x32xf32>
    %550 = vector.extract_strided_slice %531 {offsets = [0, 96], sizes = [8, 32], strides = [1, 1]} : vector<8x128xf32> to vector<8x32xf32>
    %cst_189 = arith.constant 5.000000e-01 : f32
    %551 = vector.broadcast %cst_189 : f32 to vector<8x32xf32>
    %552 = arith.mulf %551, %550 : vector<8x32xf32>
    %553 = math.tanh %552 : vector<8x32xf32>
    %cst_190 = arith.constant 5.000000e-01 : f32
    %554 = vector.broadcast %cst_190 : f32 to vector<8x32xf32>
    %555 = arith.mulf %554, %553 : vector<8x32xf32>
    %cst_191 = arith.constant 5.000000e-01 : f32
    %556 = vector.broadcast %cst_191 : f32 to vector<8x32xf32>
    %557 = arith.addf %555, %556 : vector<8x32xf32>
    %558 = arith.mulf %547, %488 : vector<8x32xf32>
    %559 = arith.mulf %539, %549 : vector<8x32xf32>
    %560 = arith.addf %558, %559 : vector<8x32xf32>
    %561 = math.tanh %560 : vector<8x32xf32>
    %562 = arith.mulf %557, %561 : vector<8x32xf32>
    %563 = tpu.concatenate %562, %525 in 1 : vector<8x32xf32>, vector<8x32xf32> -> vector<8x64xf32>
    %cst_192 = arith.constant dense<0.000000e+00> : vector<8x128xf32>
    %564 = tpu.matmul %563, %12, %cst_192 {dimension_numbers = #tpu.dot_dimension_numbers<[1], [0], [0], [1], [0, 0, 1, 1], [], []>} : vector<8x64xf32>, vector<64x128xf32>, vector<8x128xf32> -> vector<8x128xf32>
    %565 = vector.broadcast %13 : vector<1x128xf32> to vector<8x128xf32>
    %566 = arith.addf %564, %565 : vector<8x128xf32>
    %567 = vector.extract_strided_slice %566 {offsets = [0, 0], sizes = [8, 32], strides = [1, 1]} : vector<8x128xf32> to vector<8x32xf32>
    %cst_193 = arith.constant 5.000000e-01 : f32
    %568 = vector.broadcast %cst_193 : f32 to vector<8x32xf32>
    %569 = arith.mulf %568, %567 : vector<8x32xf32>
    %570 = math.tanh %569 : vector<8x32xf32>
    %cst_194 = arith.constant 5.000000e-01 : f32
    %571 = vector.broadcast %cst_194 : f32 to vector<8x32xf32>
    %572 = arith.mulf %571, %570 : vector<8x32xf32>
    %cst_195 = arith.constant 5.000000e-01 : f32
    %573 = vector.broadcast %cst_195 : f32 to vector<8x32xf32>
    %574 = arith.addf %572, %573 : vector<8x32xf32>
    %575 = vector.extract_strided_slice %566 {offsets = [0, 32], sizes = [8, 32], strides = [1, 1]} : vector<8x128xf32> to vector<8x32xf32>
    %cst_196 = arith.constant 5.000000e-01 : f32
    %576 = vector.broadcast %cst_196 : f32 to vector<8x32xf32>
    %577 = arith.mulf %576, %575 : vector<8x32xf32>
    %578 = math.tanh %577 : vector<8x32xf32>
    %cst_197 = arith.constant 5.000000e-01 : f32
    %579 = vector.broadcast %cst_197 : f32 to vector<8x32xf32>
    %580 = arith.mulf %579, %578 : vector<8x32xf32>
    %cst_198 = arith.constant 5.000000e-01 : f32
    %581 = vector.broadcast %cst_198 : f32 to vector<8x32xf32>
    %582 = arith.addf %580, %581 : vector<8x32xf32>
    %583 = vector.extract_strided_slice %566 {offsets = [0, 64], sizes = [8, 32], strides = [1, 1]} : vector<8x128xf32> to vector<8x32xf32>
    %584 = math.tanh %583 : vector<8x32xf32>
    %585 = vector.extract_strided_slice %566 {offsets = [0, 96], sizes = [8, 32], strides = [1, 1]} : vector<8x128xf32> to vector<8x32xf32>
    %cst_199 = arith.constant 5.000000e-01 : f32
    %586 = vector.broadcast %cst_199 : f32 to vector<8x32xf32>
    %587 = arith.mulf %586, %585 : vector<8x32xf32>
    %588 = math.tanh %587 : vector<8x32xf32>
    %cst_200 = arith.constant 5.000000e-01 : f32
    %589 = vector.broadcast %cst_200 : f32 to vector<8x32xf32>
    %590 = arith.mulf %589, %588 : vector<8x32xf32>
    %cst_201 = arith.constant 5.000000e-01 : f32
    %591 = vector.broadcast %cst_201 : f32 to vector<8x32xf32>
    %592 = arith.addf %590, %591 : vector<8x32xf32>
    %593 = arith.mulf %582, %523 : vector<8x32xf32>
    %594 = arith.mulf %574, %584 : vector<8x32xf32>
    %595 = arith.addf %593, %594 : vector<8x32xf32>
    %596 = math.tanh %595 : vector<8x32xf32>
    %597 = arith.mulf %592, %596 : vector<8x32xf32>
    %c8_i32_202 = arith.constant 8 : i32
    %c0_203 = arith.constant 0 : index
    %c0_204 = arith.constant 0 : index
    %c0_205 = arith.constant 0 : index
    %598 = vector.load %arg8[%c0_203, %c0_204, %c0_205] : memref<2x8x32xf32, #tpu.memory_space<vmem>>, vector<1x8x32xf32>
    %599 = vector.shape_cast %598 : vector<1x8x32xf32> to vector<8x32xf32>
    %600 = vector.shape_cast %562 : vector<8x32xf32> to vector<1x8x32xf32>
    tpu.vector_store %arg8[%c0_203, %c0_204, %c0_205], %600 {strides = array<i32>} : memref<2x8x32xf32, #tpu.memory_space<vmem>>, vector<1x8x32xf32>,
    %c1_206 = arith.constant 1 : index
    %c0_207 = arith.constant 0 : index
    %c0_208 = arith.constant 0 : index
    %601 = vector.load %arg8[%c1_206, %c0_207, %c0_208] : memref<2x8x32xf32, #tpu.memory_space<vmem>>, vector<1x8x32xf32>
    %602 = vector.shape_cast %601 : vector<1x8x32xf32> to vector<8x32xf32>
    %603 = vector.shape_cast %597 : vector<8x32xf32> to vector<1x8x32xf32>
    tpu.vector_store %arg8[%c1_206, %c0_207, %c0_208], %603 {strides = array<i32>} : memref<2x8x32xf32, #tpu.memory_space<vmem>>, vector<1x8x32xf32>,
    %c0_209 = arith.constant 0 : index
    %c0_210 = arith.constant 0 : index
    %c0_211 = arith.constant 0 : index
    %604 = vector.load %arg9[%c0_209, %c0_210, %c0_211] : memref<2x8x32xf32, #tpu.memory_space<vmem>>, vector<1x8x32xf32>
    %605 = vector.shape_cast %604 : vector<1x8x32xf32> to vector<8x32xf32>
    %606 = vector.shape_cast %560 : vector<8x32xf32> to vector<1x8x32xf32>
    tpu.vector_store %arg9[%c0_209, %c0_210, %c0_211], %606 {strides = array<i32>} : memref<2x8x32xf32, #tpu.memory_space<vmem>>, vector<1x8x32xf32>,
    %c1_212 = arith.constant 1 : index
    %c0_213 = arith.constant 0 : index
    %c0_214 = arith.constant 0 : index
    %607 = vector.load %arg9[%c1_212, %c0_213, %c0_214] : memref<2x8x32xf32, #tpu.memory_space<vmem>>, vector<1x8x32xf32>
    %608 = vector.shape_cast %607 : vector<1x8x32xf32> to vector<8x32xf32>
    %609 = vector.shape_cast %595 : vector<8x32xf32> to vector<1x8x32xf32>
    tpu.vector_store %arg9[%c1_212, %c0_213, %c0_214], %609 {strides = array<i32>} : memref<2x8x32xf32, #tpu.memory_space<vmem>>, vector<1x8x32xf32>,
    return
  }
  func.func @transform_0(%arg0: i32, %arg1: i32) -> (i32, i32, i32) {
    %c0_i32 = arith.constant 0 : i32
    %c0_i32_0 = arith.constant 0 : i32
    return %arg0, %arg1, %c0_i32 : i32, i32, i32
  }
  func.func @transform_1(%arg0: i32, %arg1: i32) -> (i32, i32) {
    %c0_i32 = arith.constant 0 : i32
    %c0_i32_0 = arith.constant 0 : i32
    %c0_i32_1 = arith.constant 0 : i32
    return %c0_i32, %c0_i32_0 : i32, i32
  }
  func.func @transform_2(%arg0: i32, %arg1: i32) -> (i32, i32) {
    %c0_i32 = arith.constant 0 : i32
    %c0_i32_0 = arith.constant 0 : i32
    %c0_i32_1 = arith.constant 0 : i32
    return %c0_i32, %c0_i32_0 : i32, i32
  }
  func.func @transform_3(%arg0: i32, %arg1: i32) -> (i32, i32) {
    %c0_i32 = arith.constant 0 : i32
    %c0_i32_0 = arith.constant 0 : i32
    %c0_i32_1 = arith.constant 0 : i32
    return %c0_i32, %c0_i32_0 : i32, i32
  }
  func.func @transform_4(%arg0: i32, %arg1: i32) -> (i32, i32) {
    %c0_i32 = arith.constant 0 : i32
    %c0_i32_0 = arith.constant 0 : i32
    %c0_i32_1 = arith.constant 0 : i32
    return %c0_i32, %c0_i32_0 : i32, i32
  }
  func.func @transform_5(%arg0: i32, %arg1: i32) -> (i32, i32) {
    %c0_i32 = arith.constant 0 : i32
    %c0_i32_0 = arith.constant 0 : i32
    %c0_i32_1 = arith.constant 0 : i32
    return %c0_i32, %c0_i32_0 : i32, i32
  }
  func.func @transform_6(%arg0: i32, %arg1: i32) -> (i32, i32, i32) {
    %c0_i32 = arith.constant 0 : i32
    %c0_i32_0 = arith.constant 0 : i32
    %c0_i32_1 = arith.constant 0 : i32
    return %c0_i32, %arg0, %c0_i32_0 : i32, i32, i32
  }
  func.func @transform_7(%arg0: i32, %arg1: i32) -> (i32, i32, i32) {
    %c0_i32 = arith.constant 0 : i32
    %c0_i32_0 = arith.constant 0 : i32
    %c0_i32_1 = arith.constant 0 : i32
    return %c0_i32, %arg0, %c0_i32_0 : i32, i32, i32
  }
}

</mosaic_0001>

<bundles_post_ra>
// kernel: elstm_forward.1
= control target key start
LH: loop header
LB: loop body
LE: loop exit
PB: predicated region body
PF: predicated region fallthrough
CT: control target
= control target key end

     0   :  { %vm29_vm0 = vcmask 261120   ;;  %v2378_v0 = vmov 0.0   ;;  %vm2379_vm1 = vmmov 0   ;;  %vm51_vm2 = vcmask 130048   ;;  %s2380_s28 = smov 64   ;;  %s2381_s8 = smov 32   ;;  %s3014_s1 = inlined_call_operand.vmem [shape: f32[16,128], index: 1, kind: input, shape index: {}]   ;;  %s3015_s2 = inlined_call_operand.vmem [shape: f32[32,128], index: 2, kind: input, shape index: {}]   ;;  %s3016_s0 = inlined_call_operand.vmem [shape: f32[1,64,16], index: 0, kind: input, shape index: {}]   ;;  %s3017_s6 = inlined_call_operand.vmem [shape: f32[2,8,32], index: 6, kind: output, shape index: {0}]   ;;  %s3018_s7 = inlined_call_operand.vmem [shape: f32[2,8,32], index: 7, kind: output, shape index: {1}]   ;;  %s3019_s4 = inlined_call_operand.vmem [shape: f32[1,128], index: 4, kind: input, shape index: {}]   ;;  %s3020_s3 = inlined_call_operand.vmem [shape: f32[64,128], index: 3, kind: input, shape index: {}]   ;;  %s3021_s5 = inlined_call_operand.vmem [shape: f32[1,128], index: 5, kind: input, shape index: {}]  }
   0x1   :  { %2024 = vmatprep.subr.mxu1 %v2378_v0  ;;  %v43_v1 = vld [vmem:[%s3014_s1 + $0x8] sm:$0xff]  ;;  %v2430_v2 = vld [vmem:[%s3015_s2 + $0x18] sm:$0xff]  ;;  %v42_v3 = vld [vmem:[%s3014_s1] sm:$0xff]  ;;  %2032 = vmatprep.mubr.msk.f32.mxu1 %vm2379_vm1, %v2378_v0  ;;  %30 = vst.msk [vmem:[%s3017_s6] sm:$0xff] %vm29_vm0, %v2378_v0  ;;  %vm325_vm3 = vcmask 523264  }
   0x2   :  { %31 = vst.msk [vmem:[%s3017_s6 + $0x8] sm:$0xff] %vm29_vm0, %v2378_v0  ;;  %2008 = vmatprep.subr.mxu0 %v43_v1  ;;  %2025 = vmatpush3.msra.mxu1 %v2430_v2  ;;  %v2451_v4 = vld [vmem:[%s3015_s2 + $0x10] sm:$0xff]  ;;  %v34_v5 = vld [vmem:[%s3016_s0] sm:$0xff]  ;;  %v35_v6 = vld [vmem:[%s3016_s0 + $0x8] sm:$0xff] }
   0x3   :  { %2009 = vmatpush3.msra.mxu0 %v43_v1  ;;  %2026 = vmatprep.subr.mxu1 %v2378_v0  ;;  %v2464_v7 = vld [vmem:[%s3015_s2 + $0x8] sm:$0xff]  ;;  %v2472_v8 = vld [vmem:[%s3015_s2] sm:$0xff]  ;;  %32 = vst.msk [vmem:[%s3018_s7] sm:$0xff] %vm29_vm0, %v2378_v0  ;;  %33 = vst.msk [vmem:[%s3018_s7 + $0x8] sm:$0xff] %vm29_vm0, %v2378_v0 }
   0x4   :  { %2010 = vmatprep.subr.mxu0 %v42_v3  ;;  %2027 = vmatpush3.msra.mxu1 %v2451_v4  ;;  %v2500_v11 = vld [vmem:[%s3019_s4] ss:$0 sm:$0xff]  ;;  %v36_v29 = vld [vmem:[%s3016_s0 + $0x10] sm:$0xff]  ;;  %v37_v30 = vld [vmem:[%s3016_s0 + $0x18] sm:$0xff] }
   0x5   :  { %2011 = vmatpush3.msra.mxu0 %v42_v3  ;;  %2012 = vmatprep.mubr.msk.f32.mxu0 %vm51_vm2, %v34_v5  ;;  %v2525_v31 = vld [vmem:[%s3020_s3 + $0x38] sm:$0xff]  ;;  %v2531_v32 = vld [vmem:[%s3020_s3 + $0x30] sm:$0xff]  ;;  %v38_v33 = vld [vmem:[%s3016_s0 + $0x20] sm:$0xff] }
   0x6   :  { %2028 = vmatprep.subr.mxu1 %v2378_v0  ;;  %2013 = vmatmul.mubr.msk.f32.vlgmr.msra.gmra.mxu0 %vm51_vm2, %v35_v6  ;;  %v2543_v34 = vld [vmem:[%s3020_s3 + $0x28] sm:$0xff]  ;;  %v2554_v36 = vld [vmem:[%s3020_s3 + $0x20] sm:$0xff]  ;;  %v40_v37 = vld [vmem:[%s3016_s0 + $0x30] sm:$0xff] }
   0x7   :  { %2029 = vmatpush3.msra.mxu1 %v2464_v7  ;;  %2035 = vmatprep.subr.mxu0 %v2378_v0  ;;  %v39_v35 = vld [vmem:[%s3016_s0 + $0x28] sm:$0xff]  ;;  %v2567_v38 = vld [vmem:[%s3020_s3 + $0x18] sm:$0xff]  ;;  %v2580_v41 = vld [vmem:[%s3020_s3 + $0x10] sm:$0xff] }
   0x8   :  { %2030 = vmatprep.subr.mxu1 %v2378_v0  ;;  %v202_v9 = vld [vmem:[%s3017_s6] sm:$0xff]  ;;  %2015 = vmatprep.mubr.msk.f32.mxu0 %vm51_vm2, %v36_v29  ;;  %v41_v39 = vld [vmem:[%s3016_s0 + $0x38] sm:$0xff]  ;;  %v2592_v43 = vld [vmem:[%s3020_s3 + $0x8] sm:$0xff] }
   0x9   :  { %2031 = vmatpush3.msra.mxu1 %v2472_v8  ;;  %2036 = vmatpush3.msra.mxu0 %v2525_v31  ;;  %v1865_v42 = vld [vmem:[%s3017_s6 + $0x8] sm:$0xff]  ;;  %v2602_v44 = vld [vmem:[%s3020_s3] sm:$0xff] }
   0xa   :  { %2033 = vmatmul.mubr.msk.f32.vlgmr.msra.gmra.mxu1 %vm29_vm0, %v202_v9  ;;  %2065 = vmatprep.subr.mxu1 %v2378_v0  ;;  %v203_v18 = vld [vmem:[%s3018_s7] sm:$0xff]  ;;  %v1866_v3 = vld [vmem:[%s3018_s7 + $0x8] sm:$0xff] }
   0xb   :  { %2081 = vmatprep.mubr.msk.f32.mxu1 %vm2379_vm1, %v2378_v0  ;;  %2066 = vmatpush3.msra.mxu1 %v2525_v31  ;;  %v2659_v56 = vld [vmem:[%s3021_s5] ss:$0 sm:$0xff] }
   0xc   :  { %2037 = vmatprep.subr.mxu0 %v2378_v0  ;;  %2016 = vmatmul.mubr.msk.f32.gmra.mxu0 %vm51_vm2, %v37_v30 }
   0xd   :  { %2038 = vmatpush3.msra.mxu0 %v2531_v32  ;;  %2018 = vmatprep.mubr.msk.f32.mxu0 %vm51_vm2, %v38_v33 }
   0xe   :  { %2039 = vmatprep.subr.mxu0 %v2378_v0  ;;  %2067 = vmatprep.subr.mxu1 %v2378_v0 }
   0xf   :  { %2040 = vmatpush3.msra.mxu0 %v2543_v34  ;;  %2068 = vmatpush3.msra.mxu1 %v2531_v32 }
  0x10   :  { %2041 = vmatprep.subr.mxu0 %v2378_v0  ;;  %2019 = vmatmul.mubr.msk.f32.gmra.mxu0 %vm51_vm2, %v39_v35 }
  0x11   :  { %2042 = vmatpush3.msra.mxu0 %v2554_v36  ;;  %2021 = vmatprep.mubr.msk.f32.mxu0 %vm51_vm2, %v40_v37 }
  0x12   :  { %2043 = vmatprep.subr.mxu0 %v2378_v0  ;;  %2069 = vmatprep.subr.mxu1 %v2378_v0 }
  0x13   :  { %2044 = vmatpush3.msra.mxu0 %v2567_v38  ;;  %2070 = vmatpush3.msra.mxu1 %v2543_v34 }
  0x14   :  { %2045 = vmatprep.subr.mxu0 %v2378_v0  ;;  %2022 = vmatmul.mubr.msk.f32.gmra.mxu0 %vm51_vm2, %v41_v39 }
  0x15   :  { %2071 = vmatprep.subr.mxu1 %v2378_v0  ;;  %2046 = vmatpush3.msra.mxu0 %v2580_v41 }
  0x16   :  { %2051 = vmatprep.mubr.msk.f32.mxu0 %vm2379_vm1, %v2378_v0  ;;  %2047 = vmatprep.subr.mxu0 %v2378_v0 }
  0x17   :  { %2072 = vmatpush3.msra.mxu1 %v2554_v36  ;;  %2048 = vmatpush3.msra.mxu0 %v2592_v43 }
  0x18   :  { %2049 = vmatprep.subr.mxu0 %v2378_v0  ;;  %2073 = vmatprep.subr.mxu1 %v2378_v0 }
  0x19   :  { %2050 = vmatpush3.msra.mxu0 %v2602_v44  ;;  %2074 = vmatpush3.msra.mxu1 %v2567_v38 }
  0x1a   :  { %2054 = vmatprep.subr.mxu0 %v2378_v0  ;;  %2075 = vmatprep.subr.mxu1 %v2378_v0 }
  0x1b   :  { %2076 = vmatpush3.msra.mxu1 %v2580_v41 }
  0x1c   :  { %2077 = vmatprep.subr.mxu1 %v2378_v0 }
  0x1d   :  { %2078 = vmatpush3.msra.mxu1 %v2592_v43 }
  0x1e   :  { %2079 = vmatprep.subr.mxu1 %v2378_v0 }
  0x1f   :  { %2080 = vmatpush3.msra.mxu1 %v2602_v44 }
  0x20   :  { %2114 = vmatprep.subr.mxu1 %v2378_v0 }
  0xc6   :  { %v2495_v10 = vpop.f32.mrf.mxu0 }
  0xc7   :  { %v148_v60 = vadd.f32 %v2495_v10, %v2500_v11 }
  0xc8   :  { %v142_v12 = vpop.f32.mrf.mxu0 }
  0xc9   :  { %v143_v13 = vadd.f32 %v2500_v11, %v142_v12 }
  0xca   :  { %v279_v14 = vpop.f32.mrf.mxu1 }
  0xcb   :  { %v283_v15 = vadd.f32 %v279_v14, %v143_v13 }
  0xcc   :  { %v2034_v16 = vpop.f32.mrf.mxu1  ;;  %v2644_v50 = vpop.f32.mrf.mxu0 }
  0xcd   :  { %2269 = vtanh.f32 %v283_v15  ;;  %v284_v19 = vmul.f32 0.5, %v283_v15 }
  0xce   :  { %v2646_v51 = vpop.f32.mrf.mxu0 }
  0xcf   :  { %2271 = vtanh.f32 %v284_v19 }
  0xd0   :  { %v2648_v52 = vpop.f32.mrf.mxu0 }
  0xd2   :  { %v2650_v53 = vpop.f32.mrf.mxu0 }
  0xd4   :  { %v2652_v54 = vpop.f32.mrf.mxu0 }
  0xd6   :  { %v2654_v55 = vpop.f32.mrf.mxu0 }
  0xda   :  { %v2270_v17 = vpop.eup %2269 }
  0xdb   :  { %295 = vrot.lane.b32.xlu0 %v2270_v17, %s2380_s28 }
  0xdc   :  { %v2272_v20 = vpop.eup %2271 }
  0xdd   :  { %v286_v21 = vmul.f32 0.5, %v2272_v20 }
  0xdf   :  { %290 = vrot.lane.b32.xlu0 %v203_v18, %s2381_s8  ;;  %v2508_v22 = vadd.f32 0.5, %v286_v21 }
 0x14d   :  { %v296_v23 = vpop.permute.xlu0 %295 }
 0x14e   :  { %v298_v24 = vmul.f32 %v296_v23, %v2508_v22 }
 0x150   :  { %300 = vrot.lane.b32.xlu1 %v298_v24, %s2381_s8 }
 0x151   :  { %v291_v25 = vpop.permute.xlu0 %290 }
 0x152   :  { %v293_v26 = vmul.f32 %v291_v25, %v2508_v22 }
 0x1c2   :  { %v301_v27 = vpop.permute.xlu1 %300 }
 0x1c3   :  { %v2513_v28 = vadd.f32 %v301_v27, %v293_v26 }
 0x1c5   :  { %2273 = vtanh.f32 %v2513_v28 }
 0x1d2   :  { %v2274_v40 = vpop.eup %2273 }
 0x1d3   :  { %306 = vrot.lane.b32.xlu1 %v2274_v40, %s2380_s28 }
 0x1d7   :  { %315 = vrot.lane.b32.xlu1 %v1865_v42, %s2381_s8 }
 0x245   :  { %v307_v45 = vpop.permute.xlu1 %306 }
 0x246   :  { %v309_v46 = vmul.f32 %v307_v45, %v2508_v22  ;;  %v153_v45 = vadd.f32 %v2500_v11, %v2646_v51 }
 0x248   :  { %311 = vrot.lane.b32.xlu0 %v309_v46, %s2381_s8 }
 0x249   :  { %v316_v47 = vpop.permute.xlu1 %315 }
 0x2ba   :  { %v312_v48 = vpop.permute.xlu0 %311 }
 0x2bb   :  { %v318_v49 = vsel %vm29_vm0, %v312_v48, %v316_v47 }
 0x2bc   :  { %2052 = vmatmul.mubr.msk.f32.vlgmr.msra.gmra.mxu0 %vm325_vm3, %v318_v49 }
 0x2bd   :  { %2055 = vmatpush3.msra.mxu0 %v2430_v2  ;;  %2062 = vmatprep.mubr.msk.f32.mxu0 %vm2379_vm1, %v2378_v0 }
 0x2be   :  { %2056 = vmatprep.subr.mxu0 %v2378_v0 }
 0x2bf   :  { %2057 = vmatpush3.msra.mxu0 %v2451_v4 }
 0x2c0   :  { %2058 = vmatprep.subr.mxu0 %v2378_v0 }
 0x2c1   :  { %2059 = vmatpush3.msra.mxu0 %v2464_v7 }
 0x2c2   :  { %2060 = vmatprep.subr.mxu0 %v2378_v0 }
 0x2c3   :  { %2061 = vmatpush3.msra.mxu0 %v2472_v8 }
 0x2c4   :  { %2063 = vmatmul.mubr.msk.f32.vlgmr.msra.gmra.mxu0 %vm29_vm0, %v312_v48  ;;  %2084 = vmatprep.subr.mxu0 %v2378_v0 }
 0x2c5   :  { %2085 = vmatpush3.msra.mxu0 %v2430_v2  ;;  %2092 = vmatprep.mubr.msk.f32.mxu0 %vm2379_vm1, %v2378_v0 }
 0x2c6   :  { %2086 = vmatprep.subr.mxu0 %v2378_v0 }
 0x2c7   :  { %2087 = vmatpush3.msra.mxu0 %v2451_v4 }
 0x2c8   :  { %2088 = vmatprep.subr.mxu0 %v2378_v0 }
 0x2c9   :  { %2089 = vmatpush3.msra.mxu0 %v2464_v7 }
 0x2ca   :  { %2090 = vmatprep.subr.mxu0 %v2378_v0 }
 0x2cb   :  { %2091 = vmatpush3.msra.mxu0 %v2472_v8 }
 0x2cc   :  { %2095 = vmatprep.subr.mxu0 %v2378_v0 }
 0x37c   :  { %v395_v57 = vpop.f32.mrf.mxu0 }
 0x37d   :  { %v396_v58 = vadd.f32 %v2659_v56, %v395_v57 }
 0x37e   :  { %v2053_v59 = vpop.f32.mrf.mxu0 }
 0x37f   :  { %2275 = vtanh.f32 %v396_v58  ;;  %v399_v6 = vmul.f32 0.5, %v396_v58 }
 0x384   :  { %v495_v61 = vpop.f32.mrf.mxu0 }
 0x385   :  { %v499_v62 = vadd.f32 %v495_v61, %v148_v60 }
 0x386   :  { %v2064_v63 = vpop.f32.mrf.mxu0 }
 0x387   :  { %2277 = vtanh.f32 %v499_v62  ;;  %v500_v9 = vmul.f32 0.5, %v499_v62 }
 0x388   :  { %2279 = vtanh.f32 %v399_v6 }
 0x389   :  { %2281 = vtanh.f32 %v500_v9 }
 0x38c   :  { %v2276_v1 = vpop.eup %2275 }
 0x38d   :  { %410 = vrot.lane.b32.xlu0 %v2276_v1, %s2380_s28 }
 0x391   :  { %405 = vrot.lane.b32.xlu0 %v1866_v3, %s2381_s8 }
 0x394   :  { %v2278_v5 = vpop.eup %2277 }
 0x395   :  { %507 = vrot.lane.b32.xlu1 %v2278_v5, %s2380_s28  ;;  %v2280_v10 = vpop.eup %2279 }
 0x396   :  { %v401_v12 = vmul.f32 0.5, %v2280_v10  ;;  %v2282_v14 = vpop.eup %2281 }
 0x397   :  { %v502_v17 = vmul.f32 0.5, %v2282_v14 }
 0x398   :  { %v402_v13 = vadd.f32 0.5, %v401_v12 }
 0x399   :  { %v503_v18 = vadd.f32 0.5, %v502_v17 }
 0x39b   :  { %v505_v25 = vmul.f32 %v503_v18, %v2513_v28 }
 0x3ff   :  { %v411_v15 = vpop.permute.xlu0 %410 }
 0x400   :  { %v413_v16 = vmul.f32 %v411_v15, %v402_v13 }
 0x402   :  { %415 = vrot.lane.b32.xlu1 %v413_v16, %s2381_s8 }
 0x403   :  { %v406_v21 = vpop.permute.xlu0 %405 }
 0x404   :  { %v408_v22 = vmul.f32 %v406_v21, %v402_v13 }
 0x407   :  { %v508_v19 = vpop.permute.xlu1 %507 }
 0x408   :  { %v510_v20 = vmul.f32 %v508_v19, %v503_v18 }
 0x40a   :  { %512 = vrot.lane.b32.xlu0 %v510_v20, %s2381_s8 }
 0x474   :  { %v416_v23 = vpop.permute.xlu1 %415 }
 0x475   :  { %v2672_v24 = vadd.f32 %v416_v23, %v408_v22 }
 0x477   :  { %2283 = vtanh.f32 %v2672_v24 }
 0x47c   :  { %v513_v26 = vpop.permute.xlu0 %512 }
 0x47d   :  { %v2676_v27 = vadd.f32 %v513_v26, %v505_v25 }
 0x47f   :  { %2285 = vtanh.f32 %v2676_v27 }
 0x484   :  { %v2284_v29 = vpop.eup %2283 }
 0x485   :  { %421 = vrot.lane.b32.xlu1 %v2284_v29, %s2380_s28 }
 0x48c   :  { %v2286_v30 = vpop.eup %2285 }
 0x48d   :  { %518 = vrot.lane.b32.xlu0 %v2286_v30, %s2380_s28  ;;  %v158_v30 = vadd.f32 %v2644_v50, %v2500_v11 }
 0x4f7   :  { %v422_v33 = vpop.permute.xlu1 %421 }
 0x4f8   :  { %v424_v35 = vmul.f32 %v422_v33, %v402_v13 }
 0x4fa   :  { %527 = vrot.lane.b32.xlu0 %v424_v35, %s2380_s28 }
 0x4ff   :  { %v519_v37 = vpop.permute.xlu0 %518 }
 0x500   :  { %v521_v39 = vmul.f32 %v519_v37, %v503_v18 }
 0x502   :  { %523 = vrot.lane.b32.xlu1 %v521_v39, %s2381_s8 }
 0x56c   :  { %v528_v28 = vpop.permute.xlu0 %527 }
 0x574   :  { %v524_v40 = vpop.permute.xlu1 %523 }
 0x575   :  { %v530_v42 = vsel %vm29_vm0, %v524_v40, %v528_v28  ;;  %2093 = vmatmul.mubr.msk.f32.vlgmr.msra.gmra.mxu0 %vm29_vm0, %v524_v40 }
 0x576   :  { %2082 = vmatmul.mubr.msk.f32.vlgmr.msra.gmra.mxu1 %vm325_vm3, %v530_v42  ;;  %2096 = vmatpush3.msra.mxu0 %v2525_v31 }
 0x577   :  { %2097 = vmatprep.subr.mxu0 %v2378_v0  ;;  %2115 = vmatpush3.msra.mxu1 %v2430_v2 }
 0x578   :  { %2098 = vmatpush3.msra.mxu0 %v2531_v32  ;;  %2116 = vmatprep.subr.mxu1 %v2378_v0 }
 0x579   :  { %2099 = vmatprep.subr.mxu0 %v2378_v0  ;;  %2117 = vmatpush3.msra.mxu1 %v2451_v4 }
 0x57a   :  { %2100 = vmatpush3.msra.mxu0 %v2543_v34  ;;  %2118 = vmatprep.subr.mxu1 %v2378_v0 }
 0x57b   :  { %2101 = vmatprep.subr.mxu0 %v2378_v0  ;;  %2119 = vmatpush3.msra.mxu1 %v2464_v7 }
 0x57c   :  { %2102 = vmatpush3.msra.mxu0 %v2554_v36  ;;  %2120 = vmatprep.subr.mxu1 %v2378_v0 }
 0x57d   :  { %2103 = vmatprep.subr.mxu0 %v2378_v0  ;;  %2121 = vmatpush3.msra.mxu1 %v2472_v8 }
 0x57e   :  { %2104 = vmatpush3.msra.mxu0 %v2567_v38  ;;  %2122 = vmatprep.mubr.msk.f32.mxu1 %vm2379_vm1, %v2378_v0 }
 0x57f   :  { %2105 = vmatprep.subr.mxu0 %v2378_v0  ;;  %2111 = vmatprep.mubr.msk.f32.mxu0 %vm2379_vm1, %v2378_v0 }
 0x580   :  { %2106 = vmatpush3.msra.mxu0 %v2580_v41  ;;  %2125 = vmatprep.subr.mxu1 %v2378_v0 }
 0x581   :  { %2107 = vmatprep.subr.mxu0 %v2378_v0 }
 0x582   :  { %2108 = vmatpush3.msra.mxu0 %v2592_v43 }
 0x583   :  { %2109 = vmatprep.subr.mxu0 %v2378_v0 }
 0x584   :  { %2110 = vmatpush3.msra.mxu0 %v2602_v44 }
 0x585   :  { %2144 = vmatprep.subr.mxu0 %v2378_v0 }
 0x635   :  { %v696_v46 = vpop.f32.mrf.mxu0 }
 0x636   :  { %v700_v47 = vadd.f32 %v696_v46, %v153_v45  ;;  %v600_v48 = vpop.f32.mrf.mxu1 }
 0x637   :  { %v601_v49 = vadd.f32 %v2659_v56, %v600_v48  ;;  %v2094_v57 = vpop.f32.mrf.mxu0 }
 0x638   :  { %2287 = vtanh.f32 %v700_v47  ;;  %v2083_v58 = vpop.f32.mrf.mxu1  ;;  %v701_v61 = vmul.f32 0.5, %v700_v47 }
 0x639   :  { %2289 = vtanh.f32 %v601_v49  ;;  %v604_v62 = vmul.f32 0.5, %v601_v49 }
 0x63a   :  { %2291 = vtanh.f32 %v701_v61 }
 0x63b   :  { %2293 = vtanh.f32 %v604_v62 }
 0x645   :  { %v2288_v59 = vpop.eup %2287 }
 0x646   :  { %v2290_v60 = vpop.eup %2289  ;;  %708 = vrot.lane.b32.xlu0 %v2288_v59, %s2380_s28 }
 0x647   :  { %611 = vrot.lane.b32.xlu1 %v2290_v60, %s2380_s28  ;;  %v2292_v51 = vpop.eup %2291 }
 0x648   :  { %v2294_v63 = vpop.eup %2293  ;;  %v703_v1 = vmul.f32 0.5, %v2292_v51 }
 0x649   :  { %v606_v3 = vmul.f32 0.5, %v2294_v63 }
 0x64a   :  { %v704_v5 = vadd.f32 0.5, %v703_v1 }
 0x64b   :  { %v607_v9 = vadd.f32 0.5, %v606_v3 }
 0x64c   :  { %v706_v14 = vmul.f32 %v704_v5, %v2676_v27 }
 0x64d   :  { %v609_v16 = vmul.f32 %v607_v9, %v2672_v24 }
 0x6b8   :  { %v709_v6 = vpop.permute.xlu0 %708 }
 0x6b9   :  { %v711_v10 = vmul.f32 %v709_v6, %v704_v5  ;;  %v612_v12 = vpop.permute.xlu1 %611 }
 0x6ba   :  { %v614_v13 = vmul.f32 %v612_v12, %v607_v9 }
 0x6bb   :  { %713 = vrot.lane.b32.xlu0 %v711_v10, %s2381_s8 }
 0x6bc   :  { %616 = vrot.lane.b32.xlu1 %v614_v13, %s2381_s8 }
 0x72d   :  { %v714_v15 = vpop.permute.xlu0 %713 }
 0x72e   :  { %v2723_v17 = vadd.f32 %v714_v15, %v706_v14  ;;  %v617_v18 = vpop.permute.xlu1 %616 }
 0x72f   :  { %v2725_v19 = vadd.f32 %v617_v18, %v609_v16 }
 0x730   :  { %2295 = vtanh.f32 %v2723_v17 }
 0x731   :  { %2297 = vtanh.f32 %v2725_v19 }
 0x73d   :  { %v2296_v20 = vpop.eup %2295 }
 0x73e   :  { %v2298_v21 = vpop.eup %2297  ;;  %719 = vrot.lane.b32.xlu0 %v2296_v20, %s2380_s28  ;;  %v163_v20 = vadd.f32 %v2500_v11, %v2650_v53 }
 0x73f   :  { %622 = vrot.lane.b32.xlu1 %v2298_v21, %s2380_s28 }
 0x7b0   :  { %v720_v22 = vpop.permute.xlu0 %719 }
 0x7b1   :  { %v722_v23 = vmul.f32 %v720_v22, %v704_v5  ;;  %v623_v25 = vpop.permute.xlu1 %622 }
 0x7b2   :  { %v625_v26 = vmul.f32 %v623_v25, %v607_v9 }
 0x7b3   :  { %724 = vrot.lane.b32.xlu1 %v722_v23, %s2381_s8 }
 0x7b4   :  { %728 = vrot.lane.b32.xlu0 %v625_v26, %s2380_s28 }
 0x825   :  { %v725_v24 = vpop.permute.xlu1 %724 }
 0x826   :  { %2123 = vmatmul.mubr.msk.f32.vlgmr.msra.gmra.mxu1 %vm29_vm0, %v725_v24  ;;  %v729_v27 = vpop.permute.xlu0 %728 }
 0x827   :  { %v731_v29 = vsel %vm29_vm0, %v725_v24, %v729_v27  ;;  %2126 = vmatpush3.msra.mxu1 %v2525_v31  ;;  %2141 = vmatprep.mubr.msk.f32.mxu1 %vm2379_vm1, %v2378_v0 }
 0x828   :  { %2112 = vmatmul.mubr.msk.f32.vlgmr.msra.gmra.mxu0 %vm325_vm3, %v731_v29  ;;  %2127 = vmatprep.subr.mxu1 %v2378_v0 }
 0x829   :  { %2128 = vmatpush3.msra.mxu1 %v2531_v32  ;;  %2145 = vmatpush3.msra.mxu0 %v2430_v2 }
 0x82a   :  { %2129 = vmatprep.subr.mxu1 %v2378_v0  ;;  %2146 = vmatprep.subr.mxu0 %v2378_v0 }
 0x82b   :  { %2130 = vmatpush3.msra.mxu1 %v2543_v34  ;;  %2147 = vmatpush3.msra.mxu0 %v2451_v4 }
 0x82c   :  { %2131 = vmatprep.subr.mxu1 %v2378_v0  ;;  %2148 = vmatprep.subr.mxu0 %v2378_v0 }
 0x82d   :  { %2132 = vmatpush3.msra.mxu1 %v2554_v36  ;;  %2149 = vmatpush3.msra.mxu0 %v2464_v7 }
 0x82e   :  { %2133 = vmatprep.subr.mxu1 %v2378_v0  ;;  %2150 = vmatprep.subr.mxu0 %v2378_v0 }
 0x82f   :  { %2134 = vmatpush3.msra.mxu1 %v2567_v38  ;;  %2151 = vmatpush3.msra.mxu0 %v2472_v8 }
 0x830   :  { %2135 = vmatprep.subr.mxu1 %v2378_v0  ;;  %2152 = vmatprep.mubr.msk.f32.mxu0 %vm2379_vm1, %v2378_v0 }
 0x831   :  { %2136 = vmatpush3.msra.mxu1 %v2580_v41  ;;  %2155 = vmatprep.subr.mxu0 %v2378_v0 }
 0x832   :  { %2137 = vmatprep.subr.mxu1 %v2378_v0 }
 0x833   :  { %2138 = vmatpush3.msra.mxu1 %v2592_v43 }
 0x834   :  { %2139 = vmatprep.subr.mxu1 %v2378_v0 }
 0x835   :  { %2140 = vmatpush3.msra.mxu1 %v2602_v44 }
 0x836   :  { %2174 = vmatprep.subr.mxu1 %v2378_v0 }
 0x8e6   :  { %v897_v33 = vpop.f32.mrf.mxu1 }
 0x8e7   :  { %v901_v35 = vadd.f32 %v897_v33, %v158_v30 }
 0x8e8   :  { %v801_v37 = vpop.f32.mrf.mxu0  ;;  %v2124_v39 = vpop.f32.mrf.mxu1 }
 0x8e9   :  { %2299 = vtanh.f32 %v901_v35  ;;  %v802_v28 = vadd.f32 %v2659_v56, %v801_v37  ;;  %v902_v46 = vmul.f32 0.5, %v901_v35 }
 0x8ea   :  { %v2113_v40 = vpop.f32.mrf.mxu0 }
 0x8eb   :  { %2301 = vtanh.f32 %v802_v28  ;;  %v805_v47 = vmul.f32 0.5, %v802_v28 }
 0x8ec   :  { %2303 = vtanh.f32 %v902_v46 }
 0x8ed   :  { %2305 = vtanh.f32 %v805_v47 }
 0x8f6   :  { %v2300_v42 = vpop.eup %2299 }
 0x8f7   :  { %909 = vrot.lane.b32.xlu0 %v2300_v42, %s2380_s28 }
 0x8f8   :  { %v2302_v45 = vpop.eup %2301 }
 0x8f9   :  { %812 = vrot.lane.b32.xlu1 %v2302_v45, %s2380_s28  ;;  %v2304_v50 = vpop.eup %2303 }
 0x8fa   :  { %v2306_v48 = vpop.eup %2305  ;;  %v904_v49 = vmul.f32 0.5, %v2304_v50 }
 0x8fb   :  { %v807_v57 = vmul.f32 0.5, %v2306_v48 }
 0x8fc   :  { %v905_v58 = vadd.f32 0.5, %v904_v49 }
 0x8fd   :  { %v808_v61 = vadd.f32 0.5, %v807_v57 }
 0x8fe   :  { %v907_v63 = vmul.f32 %v905_v58, %v2723_v17 }
 0x8ff   :  { %v810_v5 = vmul.f32 %v808_v61, %v2725_v19 }
 0x969   :  { %v910_v59 = vpop.permute.xlu0 %909 }
 0x96a   :  { %v912_v60 = vmul.f32 %v910_v59, %v905_v58 }
 0x96b   :  { %v813_v62 = vpop.permute.xlu1 %812 }
 0x96c   :  { %914 = vrot.lane.b32.xlu0 %v912_v60, %s2381_s8  ;;  %v815_v51 = vmul.f32 %v813_v62, %v808_v61 }
 0x96e   :  { %817 = vrot.lane.b32.xlu1 %v815_v51, %s2381_s8 }
 0x9de   :  { %v915_v1 = vpop.permute.xlu0 %914 }
 0x9df   :  { %v2772_v3 = vadd.f32 %v915_v1, %v907_v63 }
 0x9e0   :  { %v818_v6 = vpop.permute.xlu1 %817 }
 0x9e1   :  { %2307 = vtanh.f32 %v2772_v3  ;;  %v2776_v9 = vadd.f32 %v818_v6, %v810_v5 }
 0x9e3   :  { %2309 = vtanh.f32 %v2776_v9 }
 0x9ee   :  { %v2308_v10 = vpop.eup %2307 }
 0x9ef   :  { %920 = vrot.lane.b32.xlu0 %v2308_v10, %s2380_s28 }
 0x9f0   :  { %v2310_v12 = vpop.eup %2309 }
 0x9f1   :  { %823 = vrot.lane.b32.xlu1 %v2310_v12, %s2380_s28 }
 0xa61   :  { %v921_v13 = vpop.permute.xlu0 %920 }
 0xa62   :  { %v923_v14 = vmul.f32 %v921_v13, %v905_v58 }
 0xa63   :  { %v824_v15 = vpop.permute.xlu1 %823 }
 0xa64   :  { %925 = vrot.lane.b32.xlu1 %v923_v14, %s2381_s8  ;;  %v826_v16 = vmul.f32 %v824_v15, %v808_v61 }
 0xa66   :  { %929 = vrot.lane.b32.xlu0 %v826_v16, %s2380_s28 }
 0xad6   :  { %v926_v17 = vpop.permute.xlu1 %925 }
 0xad7   :  { %2153 = vmatmul.mubr.msk.f32.vlgmr.msra.gmra.mxu0 %vm29_vm0, %v926_v17 }
 0xad8   :  { %2156 = vmatpush3.msra.mxu0 %v2525_v31  ;;  %2171 = vmatprep.mubr.msk.f32.mxu0 %vm2379_vm1, %v2378_v0  ;;  %v930_v18 = vpop.permute.xlu0 %929 }
 0xad9   :  { %2157 = vmatprep.subr.mxu0 %v2378_v0  ;;  %v932_v19 = vsel %vm29_vm0, %v926_v17, %v930_v18 }
 0xada   :  { %2158 = vmatpush3.msra.mxu0 %v2531_v32  ;;  %2142 = vmatmul.mubr.msk.f32.vlgmr.msra.gmra.mxu1 %vm325_vm3, %v932_v19 }
 0xadb   :  { %2159 = vmatprep.subr.mxu0 %v2378_v0  ;;  %2175 = vmatpush3.msra.mxu1 %v2430_v2 }
 0xadc   :  { %2160 = vmatpush3.msra.mxu0 %v2543_v34  ;;  %2176 = vmatprep.subr.mxu1 %v2378_v0 }
 0xadd   :  { %2161 = vmatprep.subr.mxu0 %v2378_v0  ;;  %2177 = vmatpush3.msra.mxu1 %v2451_v4 }
 0xade   :  { %2162 = vmatpush3.msra.mxu0 %v2554_v36  ;;  %2178 = vmatprep.subr.mxu1 %v2378_v0 }
 0xadf   :  { %2163 = vmatprep.subr.mxu0 %v2378_v0  ;;  %2179 = vmatpush3.msra.mxu1 %v2464_v7 }
 0xae0   :  { %2164 = vmatpush3.msra.mxu0 %v2567_v38  ;;  %2180 = vmatprep.subr.mxu1 %v2378_v0 }
 0xae1   :  { %2165 = vmatprep.subr.mxu0 %v2378_v0  ;;  %2181 = vmatpush3.msra.mxu1 %v2472_v8 }
 0xae2   :  { %2166 = vmatpush3.msra.mxu0 %v2580_v41  ;;  %2182 = vmatprep.mubr.msk.f32.mxu1 %vm2379_vm1, %v2378_v0 }
 0xae3   :  { %2167 = vmatprep.subr.mxu0 %v2378_v0  ;;  %2185 = vmatprep.subr.mxu1 %v2378_v0 }
 0xae4   :  { %2168 = vmatpush3.msra.mxu0 %v2592_v43 }
 0xae5   :  { %2169 = vmatprep.subr.mxu0 %v2378_v0 }
 0xae6   :  { %2170 = vmatpush3.msra.mxu0 %v2602_v44 }
 0xae7   :  { %2204 = vmatprep.subr.mxu0 %v2378_v0 }
 0xb97   :  { %v1098_v21 = vpop.f32.mrf.mxu0 }
 0xb98   :  { %v1102_v22 = vadd.f32 %v1098_v21, %v163_v20 }
 0xb99   :  { %v2154_v23 = vpop.f32.mrf.mxu0 }
 0xb9a   :  { %2311 = vtanh.f32 %v1102_v22  ;;  %v1002_v25 = vpop.f32.mrf.mxu1  ;;  %v1103_v30 = vmul.f32 0.5, %v1102_v22 }
 0xb9b   :  { %v1003_v26 = vadd.f32 %v2659_v56, %v1002_v25 }
 0xb9c   :  { %v2143_v24 = vpop.f32.mrf.mxu1 }
 0xb9d   :  { %2313 = vtanh.f32 %v1003_v26  ;;  %v1006_v33 = vmul.f32 0.5, %v1003_v26 }
 0xb9e   :  { %2315 = vtanh.f32 %v1103_v30 }
 0xb9f   :  { %2317 = vtanh.f32 %v1006_v33 }
 0xba7   :  { %v2312_v27 = vpop.eup %2311 }
 0xba8   :  { %1110 = vrot.lane.b32.xlu0 %v2312_v27, %s2380_s28 }
 0xbaa   :  { %v2314_v29 = vpop.eup %2313 }
 0xbab   :  { %1013 = vrot.lane.b32.xlu1 %v2314_v29, %s2380_s28  ;;  %v2316_v53 = vpop.eup %2315 }
 0xbac   :  { %v1105_v35 = vmul.f32 0.5, %v2316_v53  ;;  %v2318_v37 = vpop.eup %2317 }
 0xbad   :  { %v1008_v28 = vmul.f32 0.5, %v2318_v37 }
 0xbae   :  { %v1106_v39 = vadd.f32 0.5, %v1105_v35 }
 0xbaf   :  { %v1009_v45 = vadd.f32 0.5, %v1008_v28 }
 0xbb0   :  { %v1108_v50 = vmul.f32 %v1106_v39, %v2772_v3 }
 0xbb1   :  { %v1011_v57 = vmul.f32 %v1009_v45, %v2776_v9 }
 0xc1a   :  { %v1111_v40 = vpop.permute.xlu0 %1110 }
 0xc1b   :  { %v1113_v42 = vmul.f32 %v1111_v40, %v1106_v39 }
 0xc1d   :  { %1115 = vrot.lane.b32.xlu0 %v1113_v42, %s2381_s8  ;;  %v1014_v46 = vpop.permute.xlu1 %1013 }
 0xc1e   :  { %v1016_v47 = vmul.f32 %v1014_v46, %v1009_v45 }
 0xc20   :  { %1018 = vrot.lane.b32.xlu1 %v1016_v47, %s2381_s8 }
 0xc8f   :  { %v1116_v48 = vpop.permute.xlu0 %1115 }
 0xc90   :  { %v2822_v49 = vadd.f32 %v1116_v48, %v1108_v50 }
 0xc92   :  { %2319 = vtanh.f32 %v2822_v49  ;;  %v1019_v58 = vpop.permute.xlu1 %1018 }
 0xc93   :  { %v2826_v59 = vadd.f32 %v1019_v58, %v1011_v57 }
 0xc95   :  { %2321 = vtanh.f32 %v2826_v59 }
 0xc9f   :  { %v2320_v60 = vpop.eup %2319 }
 0xca0   :  { %1121 = vrot.lane.b32.xlu0 %v2320_v60, %s2380_s28 }
 0xca2   :  { %v2322_v61 = vpop.eup %2321 }
 0xca3   :  { %1024 = vrot.lane.b32.xlu1 %v2322_v61, %s2380_s28 }
 0xd12   :  { %v1122_v62 = vpop.permute.xlu0 %1121 }
 0xd13   :  { %v1124_v51 = vmul.f32 %v1122_v62, %v1106_v39 }
 0xd15   :  { %1126 = vrot.lane.b32.xlu1 %v1124_v51, %s2381_s8  ;;  %v1025_v63 = vpop.permute.xlu1 %1024 }
 0xd16   :  { %v1027_v1 = vmul.f32 %v1025_v63, %v1009_v45 }
 0xd18   :  { %1130 = vrot.lane.b32.xlu0 %v1027_v1, %s2380_s28 }
 0xd87   :  { %v1127_v3 = vpop.permute.xlu1 %1126 }
 0xd88   :  { %2183 = vmatmul.mubr.msk.f32.vlgmr.msra.gmra.mxu1 %vm29_vm0, %v1127_v3 }
 0xd89   :  { %2186 = vmatpush3.msra.mxu1 %v2525_v31  ;;  %2201 = vmatprep.mubr.msk.f32.mxu1 %vm2379_vm1, %v2378_v0 }
 0xd8a   :  { %2187 = vmatprep.subr.mxu1 %v2378_v0  ;;  %v1131_v5 = vpop.permute.xlu0 %1130 }
 0xd8b   :  { %2188 = vmatpush3.msra.mxu1 %v2531_v32  ;;  %v1133_v6 = vsel %vm29_vm0, %v1127_v3, %v1131_v5 }
 0xd8c   :  { %2189 = vmatprep.subr.mxu1 %v2378_v0  ;;  %2172 = vmatmul.mubr.msk.f32.vlgmr.msra.gmra.mxu0 %vm325_vm3, %v1133_v6 }
 0xd8d   :  { %2190 = vmatpush3.msra.mxu1 %v2543_v34  ;;  %2205 = vmatpush3.msra.mxu0 %v2430_v2  ;;  %v168_v2 = vadd.f32 %v2648_v52, %v2500_v11 }
 0xd8e   :  { %2191 = vmatprep.subr.mxu1 %v2378_v0  ;;  %2206 = vmatprep.subr.mxu0 %v2378_v0 }
 0xd8f   :  { %2192 = vmatpush3.msra.mxu1 %v2554_v36  ;;  %2207 = vmatpush3.msra.mxu0 %v2451_v4 }
 0xd90   :  { %2193 = vmatprep.subr.mxu1 %v2378_v0  ;;  %2208 = vmatprep.subr.mxu0 %v2378_v0 }
 0xd91   :  { %2194 = vmatpush3.msra.mxu1 %v2567_v38  ;;  %2209 = vmatpush3.msra.mxu0 %v2464_v7 }
 0xd92   :  { %2195 = vmatprep.subr.mxu1 %v2378_v0  ;;  %2210 = vmatprep.subr.mxu0 %v2378_v0 }
 0xd93   :  { %2212 = vmatprep.mubr.msk.f32.mxu0 %vm2379_vm1, %v2378_v0  ;;  %2211 = vmatpush3.msra.mxu0 %v2472_v8 }
 0xd94   :  { %2196 = vmatpush3.msra.mxu1 %v2580_v41  ;;  %2215 = vmatprep.subr.mxu0 %v2378_v0 }
 0xd95   :  { %2197 = vmatprep.subr.mxu1 %v2378_v0 }
 0xd96   :  { %2198 = vmatpush3.msra.mxu1 %v2592_v43 }
 0xd97   :  { %2199 = vmatprep.subr.mxu1 %v2378_v0 }
 0xd98   :  { %2200 = vmatpush3.msra.mxu1 %v2602_v44 }
 0xd99   :  { %2234 = vmatprep.subr.mxu1 %v2378_v0 }
 0xe48   :  { %v1299_v4 = vpop.f32.mrf.mxu1 }
 0xe49   :  { %v1303_v7 = vadd.f32 %v1299_v4, %v168_v2 }
 0xe4a   :  { %v2184_v8 = vpop.f32.mrf.mxu1 }
 0xe4b   :  { %2323 = vtanh.f32 %v1303_v7  ;;  %v1304_v15 = vmul.f32 0.5, %v1303_v7 }
 0xe4c   :  { %v1203_v9 = vpop.f32.mrf.mxu0 }
 0xe4d   :  { %v1204_v10 = vadd.f32 %v2659_v56, %v1203_v9 }
 0xe4e   :  { %v2173_v12 = vpop.f32.mrf.mxu0 }
 0xe4f   :  { %2325 = vtanh.f32 %v1204_v10  ;;  %v1207_v16 = vmul.f32 0.5, %v1204_v10 }
 0xe50   :  { %2327 = vtanh.f32 %v1304_v15 }
 0xe51   :  { %2329 = vtanh.f32 %v1207_v16 }
 0xe58   :  { %v2324_v13 = vpop.eup %2323 }
 0xe59   :  { %1311 = vrot.lane.b32.xlu0 %v2324_v13, %s2380_s28 }
 0xe5c   :  { %v2326_v14 = vpop.eup %2325 }
 0xe5d   :  { %1214 = vrot.lane.b32.xlu1 %v2326_v14, %s2380_s28  ;;  %v2328_v52 = vpop.eup %2327 }
 0xe5e   :  { %v1306_v17 = vmul.f32 0.5, %v2328_v52  ;;  %v2330_v18 = vpop.eup %2329 }
 0xe5f   :  { %v1209_v21 = vmul.f32 0.5, %v2330_v18 }
 0xe60   :  { %v1307_v19 = vadd.f32 0.5, %v1306_v17 }
 0xe61   :  { %v1210_v23 = vadd.f32 0.5, %v1209_v21 }
 0xe62   :  { %v1309_v24 = vmul.f32 %v1307_v19, %v2822_v49 }
 0xe63   :  { %v1212_v30 = vmul.f32 %v1210_v23, %v2826_v59 }
 0xecb   :  { %v1312_v20 = vpop.permute.xlu0 %1311 }
 0xecc   :  { %v1314_v22 = vmul.f32 %v1312_v20, %v1307_v19  ;;  %v2370_v20 = vld [vmem:[%s3020_s3 + $0x30] sm:$0xff] }
 0xece   :  { %1316 = vrot.lane.b32.xlu0 %v1314_v22, %s2381_s8  ;;  %v2371_v22 = vld [vmem:[%s3020_s3 + $0x28] sm:$0xff] }
 0xecf   :  { %v1215_v25 = vpop.permute.xlu1 %1214 }
 0xed0   :  { %v1217_v26 = vmul.f32 %v1215_v25, %v1210_v23  ;;  %v2372_v25 = vld [vmem:[%s3020_s3 + $0x20] sm:$0xff] }
 0xed2   :  { %1219 = vrot.lane.b32.xlu1 %v1217_v26, %s2381_s8  ;;  %v2373_v26 = vld [vmem:[%s3020_s3 + $0x18] sm:$0xff] }
 0xf40   :  { %v1317_v27 = vpop.permute.xlu0 %1316 }
 0xf41   :  { %v2872_v29 = vadd.f32 %v1317_v27, %v1309_v24  ;;  %v2374_v24 = vld [vmem:[%s3020_s3 + $0x10] sm:$0xff]  ;;  %v2375_v27 = vld [vmem:[%s3020_s3 + $0x8] sm:$0xff] }
 0xf43   :  { %2331 = vtanh.f32 %v2872_v29 }
 0xf44   :  { %v1220_v33 = vpop.permute.xlu1 %1219 }
 0xf45   :  { %v2876_v53 = vadd.f32 %v1220_v33, %v1212_v30 }
 0xf47   :  { %2333 = vtanh.f32 %v2876_v53 }
 0xf50   :  { %v2332_v35 = vpop.eup %2331 }
 0xf51   :  { %1322 = vrot.lane.b32.xlu0 %v2332_v35, %s2380_s28 }
 0xf54   :  { %v2334_v37 = vpop.eup %2333 }
 0xf55   :  { %1225 = vrot.lane.b32.xlu1 %v2334_v37, %s2380_s28 }
 0xfc3   :  { %v1323_v39 = vpop.permute.xlu0 %1322 }
 0xfc4   :  { %v1325_v28 = vmul.f32 %v1323_v39, %v1307_v19  ;;  %v2369_v19 = vld [vmem:[%s3020_s3 + $0x38] sm:$0xff] }
 0xfc6   :  { %1327 = vrot.lane.b32.xlu1 %v1325_v28, %s2381_s8 }
 0xfc7   :  { %v1226_v40 = vpop.permute.xlu1 %1225 }
 0xfc8   :  { %v1228_v42 = vmul.f32 %v1226_v40, %v1210_v23 }
 0xfca   :  { %1331 = vrot.lane.b32.xlu0 %v1228_v42, %s2380_s28 }
0x1038   :  { %v1328_v45 = vpop.permute.xlu1 %1327 }
0x1039   :  { %2213 = vmatmul.mubr.msk.f32.vlgmr.msra.gmra.mxu0 %vm29_vm0, %v1328_v45 }
0x103a   :  { %2216 = vmatpush3.msra.mxu0 %v2525_v31  ;;  %2231 = vmatprep.mubr.msk.f32.mxu0 %vm2379_vm1, %v2378_v0  ;;  %v2365_v31 = vld [vmem:[%s3015_s2 + $0x18] sm:$0xff] }
0x103b   :  { %2217 = vmatprep.subr.mxu0 %v2378_v0 }
0x103c   :  { %2218 = vmatpush3.msra.mxu0 %v2531_v32  ;;  %v1332_v46 = vpop.permute.xlu0 %1331  ;;  %v2366_v32 = vld [vmem:[%s3015_s2 + $0x10] sm:$0xff] }
0x103d   :  { %2219 = vmatprep.subr.mxu0 %v2378_v0  ;;  %v1334_v47 = vsel %vm29_vm0, %v1328_v45, %v1332_v46 }
0x103e   :  { %2220 = vmatpush3.msra.mxu0 %v2543_v34  ;;  %2202 = vmatmul.mubr.msk.f32.vlgmr.msra.gmra.mxu1 %vm325_vm3, %v1334_v47  ;;  %v2367_v34 = vld [vmem:[%s3015_s2 + $0x8] sm:$0xff] }
0x103f   :  { %2221 = vmatprep.subr.mxu0 %v2378_v0  ;;  %2235 = vmatpush3.msra.mxu1 %v2365_v31 }
0x1040   :  { %2222 = vmatpush3.msra.mxu0 %v2554_v36  ;;  %2236 = vmatprep.subr.mxu1 %v2378_v0  ;;  %v2368_v36 = vld [vmem:[%s3015_s2] sm:$0xff] }
0x1041   :  { %2223 = vmatprep.subr.mxu0 %v2378_v0  ;;  %2237 = vmatpush3.msra.mxu1 %v2366_v32 }
0x1042   :  { %2224 = vmatpush3.msra.mxu0 %v2567_v38  ;;  %2238 = vmatprep.subr.mxu1 %v2378_v0  ;;  %v173_v38 = vadd.f32 %v2500_v11, %v2654_v55 }
0x1043   :  { %2242 = vmatprep.mubr.msk.f32.mxu1 %vm2379_vm1, %v2378_v0  ;;  %2239 = vmatpush3.msra.mxu1 %v2367_v34 }
0x1044   :  { %2225 = vmatprep.subr.mxu0 %v2378_v0  ;;  %2240 = vmatprep.subr.mxu1 %v2378_v0 }
0x1045   :  { %2226 = vmatpush3.msra.mxu0 %v2580_v41  ;;  %2241 = vmatpush3.msra.mxu1 %v2368_v36 }
0x1046   :  { %2227 = vmatprep.subr.mxu0 %v2378_v0  ;;  %2245 = vmatprep.subr.mxu1 %v2378_v0 }
0x1047   :  { %2228 = vmatpush3.msra.mxu0 %v2592_v43 }
0x1048   :  { %2229 = vmatprep.subr.mxu0 %v2378_v0 }
0x1049   :  { %2230 = vmatpush3.msra.mxu0 %v2602_v44 }
0x10f9   :  { %v1500_v50 = vpop.f32.mrf.mxu0 }
0x10fa   :  { %v1504_v41 = vadd.f32 %v1500_v50, %v173_v38 }
0x10fb   :  { %v2214_v48 = vpop.f32.mrf.mxu0 }
0x10fc   :  { %2335 = vtanh.f32 %v1504_v41  ;;  %v1505_v60 = vmul.f32 0.5, %v1504_v41 }
0x10fe   :  { %v1404_v49 = vpop.f32.mrf.mxu1 }
0x10ff   :  { %v1405_v57 = vadd.f32 %v2659_v56, %v1404_v49 }
0x1100   :  { %v2203_v58 = vpop.f32.mrf.mxu1 }
0x1101   :  { %2337 = vtanh.f32 %v1405_v57  ;;  %v1408_v61 = vmul.f32 0.5, %v1405_v57 }
0x1102   :  { %2339 = vtanh.f32 %v1505_v60 }
0x1103   :  { %2341 = vtanh.f32 %v1408_v61 }
0x1109   :  { %v2336_v59 = vpop.eup %2335 }
0x110a   :  { %1512 = vrot.lane.b32.xlu0 %v2336_v59, %s2380_s28 }
0x110e   :  { %v2338_v43 = vpop.eup %2337 }
0x110f   :  { %1415 = vrot.lane.b32.xlu1 %v2338_v43, %s2380_s28  ;;  %v2340_v11 = vpop.eup %2339 }
0x1110   :  { %v1507_v55 = vmul.f32 0.5, %v2340_v11  ;;  %v2342_v62 = vpop.eup %2341 }
0x1111   :  { %v1410_v3 = vmul.f32 0.5, %v2342_v62 }
0x1112   :  { %v1508_v51 = vadd.f32 0.5, %v1507_v55 }
0x1113   :  { %v1411_v5 = vadd.f32 0.5, %v1410_v3  ;;  %v2377_v3 = vld [vmem:[%s3021_s5] ss:$0 sm:$0xff]  ;;  %s2382_s5 = smov 96  }
0x1114   :  { %v1510_v4 = vmul.f32 %v1508_v51, %v2872_v29  ;;  %v2376_v29 = vld [vmem:[%s3019_s4] ss:$0 sm:$0xff] }
0x1115   :  { %v1413_v9 = vmul.f32 %v1411_v5, %v2876_v53  ;;  %v178_v30 = vadd.f32 %v2376_v29, %v2652_v54 }
0x117c   :  { %v1513_v63 = vpop.permute.xlu0 %1512 }
0x117d   :  { %v1515_v1 = vmul.f32 %v1513_v63, %v1508_v51 }
0x117f   :  { %1517 = vrot.lane.b32.xlu0 %v1515_v1, %s2381_s8 }
0x1181   :  { %v1416_v6 = vpop.permute.xlu1 %1415 }
0x1182   :  { %v1418_v2 = vmul.f32 %v1416_v6, %v1411_v5 }
0x1184   :  { %1420 = vrot.lane.b32.xlu1 %v1418_v2, %s2381_s8 }
0x11f1   :  { %v1518_v7 = vpop.permute.xlu0 %1517 }
0x11f2   :  { %v2929_v8 = vadd.f32 %v1518_v7, %v1510_v4 }
0x11f4   :  { %2343 = vtanh.f32 %v2929_v8 }
0x11f6   :  { %v1421_v10 = vpop.permute.xlu1 %1420 }
0x11f7   :  { %v2933_v12 = vadd.f32 %v1421_v10, %v1413_v9 }
0x11f9   :  { %2345 = vtanh.f32 %v2933_v12 }
0x1201   :  { %v2344_v13 = vpop.eup %2343 }
0x1202   :  { %1523 = vrot.lane.b32.xlu0 %v2344_v13, %s2380_s28 }
0x1206   :  { %v2346_v14 = vpop.eup %2345 }
0x1207   :  { %1426 = vrot.lane.b32.xlu1 %v2346_v14, %s2380_s28 }
0x1274   :  { %v1524_v15 = vpop.permute.xlu0 %1523 }
0x1275   :  { %v1526_v16 = vmul.f32 %v1524_v15, %v1508_v51 }
0x1277   :  { %1528 = vrot.lane.b32.xlu1 %v1526_v16, %s2381_s8 }
0x1279   :  { %v1427_v52 = vpop.permute.xlu1 %1426 }
0x127a   :  { %v1429_v17 = vmul.f32 %v1427_v52, %v1411_v5 }
0x127c   :  { %1532 = vrot.lane.b32.xlu0 %v1429_v17, %s2380_s28 }
0x12e9   :  { %v1529_v18 = vpop.permute.xlu1 %1528 }
0x12ea   :  { %2243 = vmatmul.mubr.msk.f32.vlgmr.msra.gmra.mxu1 %vm29_vm0, %v1529_v18 }
0x12eb   :  { %2246 = vmatpush3.msra.mxu1 %v2369_v19  ;;  %2261 = vmatprep.mubr.msk.f32.mxu1 %vm2379_vm1, %v2378_v0 }
0x12ec   :  { %2247 = vmatprep.subr.mxu1 %v2378_v0 }
0x12ed   :  { %2248 = vmatpush3.msra.mxu1 %v2370_v20 }
0x12ee   :  { %2249 = vmatprep.subr.mxu1 %v2378_v0  ;;  %v1533_v21 = vpop.permute.xlu0 %1532 }
0x12ef   :  { %2250 = vmatpush3.msra.mxu1 %v2371_v22  ;;  %v1535_v23 = vsel %vm29_vm0, %v1529_v18, %v1533_v21 }
0x12f0   :  { %2251 = vmatprep.subr.mxu1 %v2378_v0  ;;  %2232 = vmatmul.mubr.msk.f32.vlgmr.msra.gmra.mxu0 %vm325_vm3, %v1535_v23 }
0x12f1   :  { %2252 = vmatpush3.msra.mxu1 %v2372_v25 }
0x12f2   :  { %2253 = vmatprep.subr.mxu1 %v2378_v0 }
0x12f3   :  { %2254 = vmatpush3.msra.mxu1 %v2373_v26 }
0x12f4   :  { %2255 = vmatprep.subr.mxu1 %v2378_v0 }
0x12f5   :  { %2256 = vmatpush3.msra.mxu1 %v2374_v24 }
0x12f6   :  { %2257 = vmatprep.subr.mxu1 %v2378_v0 }
0x12f7   :  { %2258 = vmatpush3.msra.mxu1 %v2375_v27 }
0x12f8   :  { %2259 = vmatprep.subr.mxu1 %v2378_v0 }
0x12f9   :  { %2260 = vmatpush3.msra.mxu1 %v2602_v44 }
0x13aa   :  { %v1701_v33 = vpop.f32.mrf.mxu1 }
0x13ab   :  { %v1705_v53 = vadd.f32 %v1701_v33, %v178_v30 }
0x13ac   :  { %v2244_v35 = vpop.f32.mrf.mxu1 }
0x13ad   :  { %2347 = vtanh.f32 %v1705_v53  ;;  %v1706_v44 = vmul.f32 0.5, %v1705_v53 }
0x13b0   :  { %v1605_v37 = vpop.f32.mrf.mxu0 }
0x13b1   :  { %v1606_v39 = vadd.f32 %v2659_v56, %v1605_v37 }
0x13b2   :  { %v2233_v28 = vpop.f32.mrf.mxu0 }
0x13b3   :  { %2349 = vtanh.f32 %v1606_v39  ;;  %v1609_v42 = vmul.f32 0.5, %v1606_v39 }
0x13b4   :  { %2351 = vtanh.f32 %v1706_v44 }
0x13b5   :  { %2353 = vtanh.f32 %v1609_v42 }
0x13ba   :  { %v2348_v40 = vpop.eup %2347 }
0x13bb   :  { %1713 = vrot.lane.b32.xlu0 %v2348_v40, %s2380_s28 }
0x13c0   :  { %v2350_v0 = vpop.eup %2349 }
0x13c1   :  { %1616 = vrot.lane.b32.xlu1 %v2350_v0, %s2380_s28  ;;  %v2352_v54 = vpop.eup %2351 }
0x13c2   :  { %v1708_v45 = vmul.f32 0.5, %v2352_v54  ;;  %v2354_v46 = vpop.eup %2353 }
0x13c3   :  { %v1611_v34 = vmul.f32 0.5, %v2354_v46 }
0x13c4   :  { %v1709_v47 = vadd.f32 0.5, %v1708_v45 }
0x13c5   :  { %v1612_v56 = vadd.f32 0.5, %v1611_v34 }
0x13c6   :  { %v1711_v50 = vmul.f32 %v1709_v47, %v2929_v8 }
0x13c7   :  { %v1614_v49 = vmul.f32 %v1612_v56, %v2933_v12 }
0x142d   :  { %v1714_v31 = vpop.permute.xlu0 %1713 }
0x142e   :  { %v1716_v32 = vmul.f32 %v1714_v31, %v1709_v47 }
0x1430   :  { %1718 = vrot.lane.b32.xlu0 %v1716_v32, %s2381_s8 }
0x1433   :  { %v1617_v36 = vpop.permute.xlu1 %1616 }
0x1434   :  { %v1619_v38 = vmul.f32 %v1617_v36, %v1612_v56 }
0x1436   :  { %1621 = vrot.lane.b32.xlu1 %v1619_v38, %s2381_s8 }
0x14a2   :  { %v1719_v41 = vpop.permute.xlu0 %1718 }
0x14a3   :  { %v1721_v48 = vadd.f32 %v1719_v41, %v1711_v50 }
0x14a5   :  { %2355 = vtanh.f32 %v1721_v48 }
0x14a8   :  { %v1622_v57 = vpop.permute.xlu1 %1621 }
0x14a9   :  { %v1624_v58 = vadd.f32 %v1622_v57, %v1614_v49 }
0x14ab   :  { %2357 = vtanh.f32 %v1624_v58 }
0x14b2   :  { %v2356_v59 = vpop.eup %2355 }
0x14b3   :  { %1724 = vrot.lane.b32.xlu0 %v2356_v59, %s2380_s28 }
0x14b8   :  { %v2358_v43 = vpop.eup %2357 }
0x14b9   :  { %1627 = vrot.lane.b32.xlu1 %v2358_v43, %s2380_s28 }
0x1525   :  { %v1725_v60 = vpop.permute.xlu0 %1724 }
0x1526   :  { %v1727_v61 = vmul.f32 %v1725_v60, %v1709_v47 }
0x1528   :  { %1729 = vrot.lane.b32.xlu1 %v1727_v61, %s2381_s8 }
0x152b   :  { %v1628_v11 = vpop.permute.xlu1 %1627 }
0x152c   :  { %v1630_v55 = vmul.f32 %v1628_v11, %v1612_v56 }
0x152e   :  { %1733 = vrot.lane.b32.xlu0 %v1630_v55, %s2380_s28 }
0x159a   :  { %v1730_v62 = vpop.permute.xlu1 %1729 }
0x159b   :  { %1832 = vst.msk [vmem:[%s3017_s6] sm:$0xff] %vm29_vm0, %v1730_v62 }
0x15a0   :  { %v1734_v51 = vpop.permute.xlu0 %1733 }
0x15a1   :  { %v1736_v63 = vsel %vm29_vm0, %v1730_v62, %v1734_v51 }
0x15a2   :  { %2262 = vmatmul.mubr.msk.f32.vlgmr.msra.gmra.mxu1 %vm325_vm3, %v1736_v63 }
0x1662   :  { %v1806_v1 = vpop.f32.mrf.mxu1 }
0x1663   :  { %v1807_v5 = vadd.f32 %v2377_v3, %v1806_v1 }
0x1664   :  { %v2263_v6 = vpop.f32.mrf.mxu1 }
0x1665   :  { %2359 = vtanh.f32 %v1807_v5  ;;  %v1810_v4 = vmul.f32 0.5, %v1807_v5 }
0x1667   :  { %2361 = vtanh.f32 %v1810_v4 }
0x1672   :  { %v2360_v2 = vpop.eup %2359 }
0x1673   :  { %1817 = vrot.lane.b32.xlu1 %v2360_v2, %s2380_s28 }
0x1674   :  { %v2362_v7 = vpop.eup %2361 }
0x1675   :  { %v1812_v8 = vmul.f32 0.5, %v2362_v7 }
0x1677   :  { %v1813_v9 = vadd.f32 0.5, %v1812_v8 }
0x1679   :  { %v1815_v13 = vmul.f32 %v1813_v9, %v1624_v58 }
0x16e5   :  { %v1818_v10 = vpop.permute.xlu1 %1817 }
0x16e6   :  { %v1820_v12 = vmul.f32 %v1818_v10, %v1813_v9 }
0x16e8   :  { %1822 = vrot.lane.b32.xlu0 %v1820_v12, %s2381_s8 }
0x175a   :  { %v1823_v14 = vpop.permute.xlu0 %1822 }
0x175b   :  { %v1825_v15 = vadd.f32 %v1823_v14, %v1815_v13 }
0x175d   :  { %2363 = vtanh.f32 %v1825_v15 }
0x176a   :  { %v2364_v16 = vpop.eup %2363 }
0x176b   :  { %1828 = vrot.lane.b32.xlu1 %v2364_v16, %s2380_s28 }
0x176f   :  { %1839 = vrot.lane.b32.xlu1 %v1721_v48, %s2382_s5 }
0x17dd   :  { %v1829_v52 = vpop.permute.xlu1 %1828 }
0x17de   :  { %v1831_v17 = vmul.f32 %v1829_v52, %v1813_v9 }
0x17e0   :  { %1834 = vrot.lane.b32.xlu0 %v1831_v17, %s2381_s8 }
0x17e1   :  { %v1840_v18 = vpop.permute.xlu1 %1839 }
0x17e2   :  { %1842 = vst.msk [vmem:[%s3018_s7] sm:$0xff] %vm29_vm0, %v1840_v18 }
0x17e4   :  { %1844 = vrot.lane.b32.xlu0 %v1825_v15, %s2382_s5 }
0x1852   :  { %v1835_v19 = vpop.permute.xlu0 %1834 }
0x1853   :  { %1884 = vst.msk [vmem:[%s3017_s6 + $0x8] sm:$0xff] %vm29_vm0, %v1835_v19 }
0x1856   :  { %v1845_v20 = vpop.permute.xlu0 %1844 }
0x1857   :  { %1885 = vst.msk [vmem:[%s3018_s7 + $0x8] sm:$0xff] %vm29_vm0, %v1845_v20 }

</bundles_post_ra>
